<compile_context>
chip_gen: v7x
topology: tpu7x:2x2x1
jax: 0.10.0
libtpu: 0.0.40
codegen_flags: <defaults>
</compile_context>

<pallas_src>
import math
from functools import partial

import jax
import jax.numpy as jnp
from jax import lax
from jax.experimental import pallas as pl
from jax.experimental.pallas import tpu as pltpu


def _round_up(x, m):
    return ((x + m - 1) // m) * m


def _cdiv(a, b):
    return (a + b - 1) // b


def _pick_tile(dim, pref, align):
    """Full (aligned) extent for small dims; for larger dims split into
    ceil(dim/pref) tiles whose aligned size minimizes padding."""
    if dim <= pref:
        return _round_up(dim, align)
    nt = _cdiv(dim, pref)
    return _round_up(_cdiv(dim, nt), align)


# ---------------------------------------------------------------------------
# Fused tiled matmul + per-column affine (folded BN / bias) + ReLU
# ---------------------------------------------------------------------------
def _mm_affine_relu_kernel(x_ref, w_ref, scale_ref, shift_ref, o_ref):
    # Single-pass variant: whole K reduction in one MXU call, no scratch.
    acc = jnp.dot(x_ref[...], w_ref[...], preferred_element_type=jnp.float32)
    y = acc * scale_ref[...] + shift_ref[...]          # (1, tn) broadcasts over rows
    o_ref[...] = jnp.maximum(y, 0.0).astype(o_ref.dtype)


def _mm_affine_relu_acc_kernel(x_ref, w_ref, scale_ref, shift_ref, o_ref, acc_ref):
    # Reduction variant: K split across the last ("arbitrary") grid axis.
    k = pl.program_id(2)

    @pl.when(k == 0)
    def _():
        acc_ref[...] = jnp.zeros_like(acc_ref)

    acc_ref[...] += jnp.dot(x_ref[...], w_ref[...], preferred_element_type=jnp.float32)

    @pl.when(k == pl.num_programs(2) - 1)
    def _():
        y = acc_ref[...] * scale_ref[...] + shift_ref[...]
        o_ref[...] = jnp.maximum(y, 0.0).astype(o_ref.dtype)


def fused_matmul_affine_relu(x, w, scale, shift, *,
                             tm_pref=256, tn_pref=256, tk_pref=512,
                             single_pass_k_max=2048,
                             compute_dtype=jnp.float32):
    """relu((x @ w) * scale + shift); x: (M, K), w: (K, N), scale/shift: (N,)."""
    M, K = x.shape
    K2, N = w.shape
    assert K == K2

    tm = _pick_tile(M, tm_pref, 8)       # sublane-aligned rows
    tn = _pick_tile(N, tn_pref, 128)     # lane-dense output stores
    Mp, Np = _round_up(M, tm), _round_up(N, tn)

    scale_p = jnp.pad(scale.reshape(1, N).astype(jnp.float32), ((0, 0), (0, Np - N)))
    shift_p = jnp.pad(shift.reshape(1, N).astype(jnp.float32), ((0, 0), (0, Np - N)))

    Kp_single = _round_up(K, 128)
    if Kp_single <= single_pass_k_max:
        # --- single-pass: whole K in VMEM, no accumulator scratch ----------
        Kp = Kp_single
        xp = jnp.pad(x, ((0, Mp - M), (0, Kp - K))).astype(compute_dtype)
        wp = jnp.pad(w, ((0, Kp - K), (0, Np - N))).astype(compute_dtype)
        grid = (Mp // tm, Np // tn)
        out = pl.pallas_call(
            _mm_affine_relu_kernel,
            out_shape=jax.ShapeDtypeStruct((Mp, Np), jnp.float32),
            grid_spec=pltpu.PrefetchScalarGridSpec(
                num_scalar_prefetch=0,
                grid=grid,
                in_specs=[
                    pl.BlockSpec((tm, Kp), lambda i, j: (i, 0)),
                    pl.BlockSpec((Kp, tn), lambda i, j: (0, j)),  # weight-stationary over i
                    pl.BlockSpec((1, tn), lambda i, j: (0, j)),
                    pl.BlockSpec((1, tn), lambda i, j: (0, j)),
                ],
                out_specs=pl.BlockSpec((tm, tn), lambda i, j: (i, j)),
            ),
            compiler_params=pltpu.CompilerParams(
                dimension_semantics=("parallel", "parallel"),
            ),
            cost_estimate=pl.CostEstimate(
                flops=2 * Mp * Np * Kp,
                transcendentals=0,
                bytes_accessed=4 * (Mp * Kp + Kp * Np + Mp * Np),
            ),
        )(xp, wp, scale_p, shift_p)
    else:
        # --- K-reduction variant with f32 VMEM accumulator ------------------
        tk = _pick_tile(K, tk_pref, 128)
        Kp = _round_up(K, tk)
        xp = jnp.pad(x, ((0, Mp - M), (0, Kp - K))).astype(compute_dtype)
        wp = jnp.pad(w, ((0, Kp - K), (0, Np - N))).astype(compute_dtype)
        grid = (Mp // tm, Np // tn, Kp // tk)
        out = pl.pallas_call(
            _mm_affine_relu_acc_kernel,
            out_shape=jax.ShapeDtypeStruct((Mp, Np), jnp.float32),
            grid_spec=pltpu.PrefetchScalarGridSpec(
                num_scalar_prefetch=0,
                grid=grid,
                in_specs=[
                    pl.BlockSpec((tm, tk), lambda i, j, k: (i, k)),
                    pl.BlockSpec((tk, tn), lambda i, j, k: (k, j)),
                    pl.BlockSpec((1, tn), lambda i, j, k: (0, j)),
                    pl.BlockSpec((1, tn), lambda i, j, k: (0, j)),
                ],
                out_specs=pl.BlockSpec((tm, tn), lambda i, j, k: (i, j)),
                scratch_shapes=[pltpu.VMEM((tm, tn), jnp.float32)],
            ),
            compiler_params=pltpu.CompilerParams(
                dimension_semantics=("parallel", "parallel", "arbitrary"),
            ),
            cost_estimate=pl.CostEstimate(
                flops=2 * Mp * Np * Kp,
                transcendentals=0,
                bytes_accessed=4 * (Mp * Kp + Kp * Np + Mp * Np),
            ),
        )(xp, wp, scale_p, shift_p)

    return out[:M, :N]


# ---------------------------------------------------------------------------
# AdaptiveAvgPool2d((1,1)) + flatten + Linear + ReLU  in ONE small kernel
# ---------------------------------------------------------------------------
def _pool_fc_relu_kernel(x_ref, w_ref, b_ref, o_ref, *, inv_hw):
    pooled = jnp.sum(x_ref[...], axis=1) * inv_hw                 # (B, C)
    y = jnp.dot(pooled, w_ref[...], preferred_element_type=jnp.float32) + b_ref[...]
    o_ref[...] = jnp.maximum(y, 0.0)


def global_avg_pool_fc_relu(x_nhwc, fc_w, fc_b):
    """(B, H, W, C) -> relu(mean_{H,W}(x) @ fc_w.T + fc_b), shape (B, out)."""
    B, H, W, C = x_nhwc.shape
    out_f, in_f = fc_w.shape
    assert in_f == C
    Np = _round_up(out_f, 128)                                    # lane-dense output
    x3 = x_nhwc.reshape(B, H * W, C).astype(jnp.float32)
    wp = jnp.pad(fc_w.T.astype(jnp.float32), ((0, 0), (0, Np - out_f)))
    bp = jnp.pad(fc_b.reshape(1, out_f).astype(jnp.float32), ((0, 0), (0, Np - out_f)))
    out = pl.pallas_call(
        partial(_pool_fc_relu_kernel, inv_hw=1.0 / (H * W)),
        out_shape=jax.ShapeDtypeStruct((B, Np), jnp.float32),
        in_specs=[pl.BlockSpec(memory_space=pltpu.MemorySpace.VMEM)] * 3,
        out_specs=pl.BlockSpec(memory_space=pltpu.MemorySpace.VMEM),
    )(x3, wp, bp)
    return out[:, :out_f]


# ---------------------------------------------------------------------------
# Conv2d + BatchNorm2d + ReLU  (NHWC; im2col in the wrapper, compute in kernel)
# ---------------------------------------------------------------------------
def _im2col_nhwc(x, kh, kw):
    """(B, H, W, C) -> (B*OH*OW, kh*kw*C); per-patch column order (kh, kw, C)."""
    B, H, W, C = x.shape
    OH, OW = H - kh + 1, W - kw + 1
    cols = [x[:, i:i + OH, j:j + OW, :] for i in range(kh) for j in range(kw)]
    p = jnp.stack(cols, axis=3)                       # (B, OH, OW, kh*kw, C)
    return p.reshape(B * OH * OW, kh * kw * C), OH, OW


def conv_bn_relu_nhwc(x_nhwc, weight, bias, gamma, beta, mean, var, eps=1e-5):
    Cout, Cin, kh, kw = weight.shape
    B = x_nhwc.shape[0]
    patches, OH, OW = _im2col_nhwc(x_nhwc, kh, kw)               # (B*OH*OW, kh*kw*Cin)
    wmat = weight.transpose(2, 3, 1, 0).reshape(kh * kw * Cin, Cout)  # (K, Cout)
    s = gamma / jnp.sqrt(var + eps)                              # fold BN into scale/shift
    shift = (bias - mean) * s + beta
    y = fused_matmul_affine_relu(patches, wmat, s, shift)        # (B*OH*OW, Cout)
    return y.reshape(B, OH, OW, Cout)                            # NHWC, no transpose


# ---------------------------------------------------------------------------
# Full ConvNet3 forward
# ---------------------------------------------------------------------------
def convnet3_forward(params, x_nchw):
    x = jnp.transpose(x_nchw, (0, 2, 3, 1))                      # NCHW -> NHWC once
    x = conv_bn_relu_nhwc(x, *params["conv1"])
    x = conv_bn_relu_nhwc(x, *params["conv2"])
    return global_avg_pool_fc_relu(x, params["fc_w"], params["fc_b"])


# ---------------------------------------------------------------------------
# Parameter init (mimics PyTorch defaults; BN stats randomized to exercise fold)
# ---------------------------------------------------------------------------
def init_convnet3_params(key):
    ks = jax.random.split(key, 8)

    def conv_block(kw_, kb_, kbn_, cin, cout, ksz):
        fan_in = cin * ksz * ksz
        bound = 1.0 / math.sqrt(fan_in)
        w = jax.random.uniform(kw_, (cout, cin, ksz, ksz), jnp.float32, -bound, bound)
        b = jax.random.uniform(kb_, (cout,), jnp.float32, -bound, bound)
        k1, k2, k3, k4 = jax.random.split(kbn_, 4)
        gamma = 1.0 + 0.1 * jax.random.normal(k1, (cout,), jnp.float32)
        beta = 0.1 * jax.random.normal(k2, (cout,), jnp.float32)
        mean = 0.1 * jax.random.normal(k3, (cout,), jnp.float32)
        var = 1.0 + 0.1 * jax.random.uniform(k4, (cout,), jnp.float32)
        return (w, b, gamma, beta, mean, var)

    bound = 1.0 / math.sqrt(32)
    fc_w = jax.random.uniform(ks[6], (10, 32), jnp.float32, -bound, bound)
    fc_b = jax.random.uniform(ks[7], (10,), jnp.float32, -bound, bound)

    return {
        "conv1": conv_block(ks[0], ks[1], ks[2], 3, 64, 3),
        "conv2": conv_block(ks[3], ks[4], ks[5], 64, 32, 3),
        "fc_w": fc_w,
        "fc_b": fc_b,
    }


# ---------------------------------------------------------------------------
# Pure-JAX reference (same semantics as the PyTorch module in eval mode)
# ---------------------------------------------------------------------------
def _ref_conv_bn_relu(x, weight, bias, gamma, beta, mean, var, eps=1e-5):
    y = lax.conv_general_dilated(
        x, weight, window_strides=(1, 1), padding="VALID",
        dimension_numbers=("NCHW", "OIHW", "NCHW"),
        precision=lax.Precision.HIGHEST)
    y = y + bias.reshape(1, -1, 1, 1)
    y = (y - mean.reshape(1, -1, 1, 1)) / jnp.sqrt(var.reshape(1, -1, 1, 1) + eps)
    y = y * gamma.reshape(1, -1, 1, 1) + beta.reshape(1, -1, 1, 1)
    return jnp.maximum(y, 0.0)


def convnet3_reference(params, x):
    y = _ref_conv_bn_relu(x, *params["conv1"])
    y = _ref_conv_bn_relu(y, *params["conv2"])
    y = jnp.mean(y, axis=(2, 3))
    y = jnp.dot(y, params["fc_w"].T, precision=lax.Precision.HIGHEST) + params["fc_b"]
    return jnp.maximum(y, 0.0)


if __name__ == "__main__":
    key = jax.random.PRNGKey(0)
    k_x, k_p = jax.random.split(key)

    batch, channels, spatial = 2, 3, 16
    x = jax.random.normal(k_x, (batch, channels, spatial, spatial), jnp.float32)
    params = init_convnet3_params(k_p)

    fwd = jax.jit(convnet3_forward)
    out = jax.block_until_ready(fwd(params, x))

    ref = convnet3_reference(params, x)
    assert out.shape == (batch, 10), out.shape
    assert jnp.allclose(out, ref, atol=1e-3, rtol=1e-3), float(jnp.max(jnp.abs(out - ref)))

    print("KERNEL_OK")
</pallas_src>

<mosaic_0001>
module attributes {stable_mosaic.version = 11 : i64} {
  func.func @_mm_affine_relu_kernel(%arg0: i32, %arg1: i32, %arg2: memref<200x128xf32, #tpu.memory_space<vmem>>, %arg3: memref<128x128xf32, #tpu.memory_space<vmem>>, %arg4: memref<1x128xf32, #tpu.memory_space<vmem>>, %arg5: memref<1x128xf32, #tpu.memory_space<vmem>>, %arg6: memref<200x128xf32, #tpu.memory_space<vmem>>) attributes {dimension_semantics = [#tpu.dimension_semantics<parallel>, #tpu.dimension_semantics<parallel>], iteration_bounds = array<i64: 2, 1>, scalar_prefetch = 0 : i64, scratch_operands = 0 : i64, tpu.core_type = #tpu.core_type<tc>, window_params = [{transform_indices = @transform_0, window_bounds = array<i64: 200, 128>}, {transform_indices = @transform_1, window_bounds = array<i64: 128, 128>}, {transform_indices = @transform_2, window_bounds = array<i64: 1, 128>}, {transform_indices = @transform_3, window_bounds = array<i64: 1, 128>}, {transform_indices = @transform_4, window_bounds = array<i64: 200, 128>}]} {
    %c0 = arith.constant 0 : index
    %c0_0 = arith.constant 0 : index
    %0 = vector.load %arg2[%c0, %c0_0] : memref<200x128xf32, #tpu.memory_space<vmem>>, vector<200x128xf32>
    %c0_1 = arith.constant 0 : index
    %c0_2 = arith.constant 0 : index
    %1 = vector.load %arg3[%c0_1, %c0_2] : memref<128x128xf32, #tpu.memory_space<vmem>>, vector<128x128xf32>
    %cst = arith.constant dense<0.000000e+00> : vector<200x128xf32>
    %2 = tpu.matmul %0, %1, %cst {dimension_numbers = #tpu.dot_dimension_numbers<[1], [0], [0], [1], [0, 0, 1, 1], [], []>} : vector<200x128xf32>, vector<128x128xf32>, vector<200x128xf32> -> vector<200x128xf32>
    %c0_3 = arith.constant 0 : index
    %c0_4 = arith.constant 0 : index
    %3 = vector.load %arg4[%c0_3, %c0_4] : memref<1x128xf32, #tpu.memory_space<vmem>>, vector<1x128xf32>
    %4 = vector.broadcast %3 : vector<1x128xf32> to vector<200x128xf32>
    %5 = arith.mulf %2, %4 : vector<200x128xf32>
    %c0_5 = arith.constant 0 : index
    %c0_6 = arith.constant 0 : index
    %6 = vector.load %arg5[%c0_5, %c0_6] : memref<1x128xf32, #tpu.memory_space<vmem>>, vector<1x128xf32>
    %7 = vector.broadcast %6 : vector<1x128xf32> to vector<200x128xf32>
    %8 = arith.addf %5, %7 : vector<200x128xf32>
    %cst_7 = arith.constant 0.000000e+00 : f32
    %9 = vector.broadcast %cst_7 : f32 to vector<200x128xf32>
    %10 = arith.maximumf %8, %9 : vector<200x128xf32>
    %c0_8 = arith.constant 0 : index
    %c0_9 = arith.constant 0 : index
    %11 = vector.load %arg6[%c0_8, %c0_9] : memref<200x128xf32, #tpu.memory_space<vmem>>, vector<200x128xf32>
    tpu.vector_store %arg6[%c0_8, %c0_9], %10 {strides = array<i32>} : memref<200x128xf32, #tpu.memory_space<vmem>>, vector<200x128xf32>,
    return
  }
  func.func @transform_0(%arg0: i32, %arg1: i32) -> (i32, i32) {
    %c0_i32 = arith.constant 0 : i32
    %c0_i32_0 = arith.constant 0 : i32
    return %arg0, %c0_i32 : i32, i32
  }
  func.func @transform_1(%arg0: i32, %arg1: i32) -> (i32, i32) {
    %c0_i32 = arith.constant 0 : i32
    %c0_i32_0 = arith.constant 0 : i32
    return %c0_i32, %arg1 : i32, i32
  }
  func.func @transform_2(%arg0: i32, %arg1: i32) -> (i32, i32) {
    %c0_i32 = arith.constant 0 : i32
    %c0_i32_0 = arith.constant 0 : i32
    return %c0_i32, %arg1 : i32, i32
  }
  func.func @transform_3(%arg0: i32, %arg1: i32) -> (i32, i32) {
    %c0_i32 = arith.constant 0 : i32
    %c0_i32_0 = arith.constant 0 : i32
    return %c0_i32, %arg1 : i32, i32
  }
  func.func @transform_4(%arg0: i32, %arg1: i32) -> (i32, i32) {
    %c0_i32 = arith.constant 0 : i32
    return %arg0, %arg1 : i32, i32
  }
}

module attributes {stable_mosaic.version = 11 : i64} {
  func.func @_mm_affine_relu_kernel(%arg0: i32, %arg1: i32, %arg2: memref<144x640xf32, #tpu.memory_space<vmem>>, %arg3: memref<640x128xf32, #tpu.memory_space<vmem>>, %arg4: memref<1x128xf32, #tpu.memory_space<vmem>>, %arg5: memref<1x128xf32, #tpu.memory_space<vmem>>, %arg6: memref<144x128xf32, #tpu.memory_space<vmem>>) attributes {dimension_semantics = [#tpu.dimension_semantics<parallel>, #tpu.dimension_semantics<parallel>], iteration_bounds = array<i64: 2, 1>, scalar_prefetch = 0 : i64, scratch_operands = 0 : i64, tpu.core_type = #tpu.core_type<tc>, window_params = [{transform_indices = @transform_0, window_bounds = array<i64: 144, 640>}, {transform_indices = @transform_1, window_bounds = array<i64: 640, 128>}, {transform_indices = @transform_2, window_bounds = array<i64: 1, 128>}, {transform_indices = @transform_3, window_bounds = array<i64: 1, 128>}, {transform_indices = @transform_4, window_bounds = array<i64: 144, 128>}]} {
    %c0 = arith.constant 0 : index
    %c0_0 = arith.constant 0 : index
    %0 = vector.load %arg2[%c0, %c0_0] : memref<144x640xf32, #tpu.memory_space<vmem>>, vector<144x640xf32>
    %c0_1 = arith.constant 0 : index
    %c0_2 = arith.constant 0 : index
    %1 = vector.load %arg3[%c0_1, %c0_2] : memref<640x128xf32, #tpu.memory_space<vmem>>, vector<640x128xf32>
    %cst = arith.constant dense<0.000000e+00> : vector<144x128xf32>
    %2 = tpu.matmul %0, %1, %cst {dimension_numbers = #tpu.dot_dimension_numbers<[1], [0], [0], [1], [0, 0, 1, 1], [], []>} : vector<144x640xf32>, vector<640x128xf32>, vector<144x128xf32> -> vector<144x128xf32>
    %c0_3 = arith.constant 0 : index
    %c0_4 = arith.constant 0 : index
    %3 = vector.load %arg4[%c0_3, %c0_4] : memref<1x128xf32, #tpu.memory_space<vmem>>, vector<1x128xf32>
    %4 = vector.broadcast %3 : vector<1x128xf32> to vector<144x128xf32>
    %5 = arith.mulf %2, %4 : vector<144x128xf32>
    %c0_5 = arith.constant 0 : index
    %c0_6 = arith.constant 0 : index
    %6 = vector.load %arg5[%c0_5, %c0_6] : memref<1x128xf32, #tpu.memory_space<vmem>>, vector<1x128xf32>
    %7 = vector.broadcast %6 : vector<1x128xf32> to vector<144x128xf32>
    %8 = arith.addf %5, %7 : vector<144x128xf32>
    %cst_7 = arith.constant 0.000000e+00 : f32
    %9 = vector.broadcast %cst_7 : f32 to vector<144x128xf32>
    %10 = arith.maximumf %8, %9 : vector<144x128xf32>
    %c0_8 = arith.constant 0 : index
    %c0_9 = arith.constant 0 : index
    %11 = vector.load %arg6[%c0_8, %c0_9] : memref<144x128xf32, #tpu.memory_space<vmem>>, vector<144x128xf32>
    tpu.vector_store %arg6[%c0_8, %c0_9], %10 {strides = array<i32>} : memref<144x128xf32, #tpu.memory_space<vmem>>, vector<144x128xf32>,
    return
  }
  func.func @transform_0(%arg0: i32, %arg1: i32) -> (i32, i32) {
    %c0_i32 = arith.constant 0 : i32
    %c0_i32_0 = arith.constant 0 : i32
    return %arg0, %c0_i32 : i32, i32
  }
  func.func @transform_1(%arg0: i32, %arg1: i32) -> (i32, i32) {
    %c0_i32 = arith.constant 0 : i32
    %c0_i32_0 = arith.constant 0 : i32
    return %c0_i32, %arg1 : i32, i32
  }
  func.func @transform_2(%arg0: i32, %arg1: i32) -> (i32, i32) {
    %c0_i32 = arith.constant 0 : i32
    %c0_i32_0 = arith.constant 0 : i32
    return %c0_i32, %arg1 : i32, i32
  }
  func.func @transform_3(%arg0: i32, %arg1: i32) -> (i32, i32) {
    %c0_i32 = arith.constant 0 : i32
    %c0_i32_0 = arith.constant 0 : i32
    return %c0_i32, %arg1 : i32, i32
  }
  func.func @transform_4(%arg0: i32, %arg1: i32) -> (i32, i32) {
    %c0_i32 = arith.constant 0 : i32
    return %arg0, %arg1 : i32, i32
  }
}

module attributes {stable_mosaic.version = 11 : i64} {
  func.func @_pool_fc_relu_kernel(%arg0: memref<2x144x32xf32, #tpu.memory_space<vmem>>, %arg1: memref<32x128xf32, #tpu.memory_space<vmem>>, %arg2: memref<1x128xf32, #tpu.memory_space<vmem>>, %arg3: memref<2x128xf32, #tpu.memory_space<vmem>>) attributes {dimension_semantics = [], scalar_prefetch = 0 : i64, scratch_operands = 0 : i64, tpu.core_type = #tpu.core_type<tc>} {
    %c0 = arith.constant 0 : index
    %c0_0 = arith.constant 0 : index
    %c0_1 = arith.constant 0 : index
    %0 = vector.load %arg0[%c0, %c0_0, %c0_1] : memref<2x144x32xf32, #tpu.memory_space<vmem>>, vector<2x144x32xf32>
    %cst = arith.constant dense<0.000000e+00> : vector<2x32xf32>
    %1 = vector.multi_reduction <add>, %0, %cst [1] : vector<2x144x32xf32> to vector<2x32xf32>
    %cst_2 = arith.constant 0.0069444445 : f32
    %2 = vector.broadcast %cst_2 : f32 to vector<2x32xf32>
    %3 = arith.mulf %1, %2 : vector<2x32xf32>
    %c0_3 = arith.constant 0 : index
    %c0_4 = arith.constant 0 : index
    %4 = vector.load %arg1[%c0_3, %c0_4] : memref<32x128xf32, #tpu.memory_space<vmem>>, vector<32x128xf32>
    %cst_5 = arith.constant dense<0.000000e+00> : vector<2x128xf32>
    %5 = tpu.matmul %3, %4, %cst_5 {dimension_numbers = #tpu.dot_dimension_numbers<[1], [0], [0], [1], [0, 0, 1, 1], [], []>} : vector<2x32xf32>, vector<32x128xf32>, vector<2x128xf32> -> vector<2x128xf32>
    %c0_6 = arith.constant 0 : index
    %c0_7 = arith.constant 0 : index
    %6 = vector.load %arg2[%c0_6, %c0_7] : memref<1x128xf32, #tpu.memory_space<vmem>>, vector<1x128xf32>
    %7 = vector.broadcast %6 : vector<1x128xf32> to vector<2x128xf32>
    %8 = arith.addf %5, %7 : vector<2x128xf32>
    %cst_8 = arith.constant 0.000000e+00 : f32
    %9 = vector.broadcast %cst_8 : f32 to vector<2x128xf32>
    %10 = arith.maximumf %8, %9 : vector<2x128xf32>
    %c0_9 = arith.constant 0 : index
    %c0_10 = arith.constant 0 : index
    %11 = vector.load %arg3[%c0_9, %c0_10] : memref<2x128xf32, #tpu.memory_space<vmem>>, vector<2x128xf32>
    tpu.vector_store %arg3[%c0_9, %c0_10], %10 {strides = array<i32>} : memref<2x128xf32, #tpu.memory_space<vmem>>, vector<2x128xf32>,
    return
  }
}

</mosaic_0001>

<bundles_post_ra>
// kernel: convnet3_forward.3
= control target key start
LH: loop header
LB: loop body
LE: loop exit
PB: predicated region body
PF: predicated region fallthrough
CT: control target
= control target key end

     0   :  { %s1006_s15 = smov 0   ;;  %s1008_s16 = smov 0   ;;  %s1261_s0 = inlined_call_operand.vmem [shape: f32[400,128], index: 0, kind: input, shape index: {}]   ;;  %s1262_s1 = inlined_call_operand.vmem [shape: f32[128,128], index: 1, kind: input, shape index: {}]   ;;  %s1263_s2 = inlined_call_operand.vmem [shape: f32[1,128], index: 2, kind: input, shape index: {}]   ;;  %s1264_s3 = inlined_call_operand.vmem [shape: f32[1,128], index: 3, kind: input, shape index: {}]   ;;  %s1265_s4 = inlined_call_operand.vmem [shape: f32[400,128], index: 4, kind: output, shape index: {}]  }
   0x1   :  { %s1010_s17 = smov 0  }
   0x2 LB: > { %s26_s18 = sadd.s32 1, %s972_s16  ;;  %p732_p0 = scmp.ge.s32.totalorder %s976_s17, 1  ;;  %s976_s17 = sphi %s1010_s17, %s14_s17   ;;  %s972_s16 = sphi %s1008_s16, %s1267_s16   ;;  %s968_s15 = sphi %s1006_s15, %s1266_s15  }
   0x3   : > { %p28_p1 = scmp.ge.s32.totalorder %s26_s18, 2  ;;  %p202_p2 = scmp.lt.s32.totalorder %s976_s17, 3 }
   0x5   : > { %s1269_s18 = smov (%p28_p1, %s26_s18), 0  ;;  %p203_p3 = pnand %p732_p0, %p202_p2 }
   0x6   : > { %v291_v0 = vld [vmem:[%s1262_s1] sm:$0xff] (!%p203_p3)  ;;  %v292_v1 = vld [vmem:[%s1262_s1 + $0x8] sm:$0xff] (!%p203_p3)  ;;  %v293_v2 = vld [vmem:[%s1262_s1 + $0x10] sm:$0xff] (!%p203_p3)  ;;  %v978_v3 = vmov (!%p203_p3), 0.0|0.0   ;;  %vm979_vm0 = vmmov (!%p203_p3), 0   ;;  %v980_v6 = vmov (!%p203_p3), 0.0  }
   0x7   : > { %206 = sbr.rel (%p203_p3) target bundleno = 307 (0x133), region = 36  ;;  %887 = vmatprep.subr.bf16.mxu0 (!%p203_p3), %v978_v3  ;;  %v888_v4 = vpack.c.bf16 (!%p203_p3), %v292_v1, %v291_v0  ;;  %911 = vmatprep.subr.bf16.mxu1 (!%p203_p3), %v978_v3  ;;  %v294_v5 = vld [vmem:[%s1262_s1 + $0x18] sm:$0xff] (!%p203_p3)  ;;  %v295_v8 = vld [vmem:[%s1262_s1 + $0x20] sm:$0xff] (!%p203_p3)  ;;  %v296_v9 = vld [vmem:[%s1262_s1 + $0x28] sm:$0xff] (!%p203_p3) }
   0x8   : > { %812 = vmatprep.mubr.msk.f32.mxu0 (!%p203_p3), %vm979_vm0, %v980_v6  ;;  %851 = vmatprep.mubr.msk.f32.mxu1 (!%p203_p3), %vm979_vm0, %v980_v6  ;;  %v891_v7 = vpack.c.bf16 (!%p203_p3), %v294_v5, %v293_v2  ;;  %v894_v10 = vpack.c.bf16 (!%p203_p3), %v296_v9, %v295_v8  ;;  %v297_v11 = vld [vmem:[%s1262_s1 + $0x30] sm:$0xff] (!%p203_p3)  ;;  %v298_v12 = vld [vmem:[%s1262_s1 + $0x38] sm:$0xff] (!%p203_p3)  ;;  %v299_v14 = vld [vmem:[%s1262_s1 + $0x40] sm:$0xff] (!%p203_p3)  ;;  %s241_s13 = smul.u32 (!%p203_p3), 25, %s968_s15 }
   0x9   : > { %889 = vmatpush3.bf16.msra.mxu0 (!%p203_p3), %v888_v4  ;;  %919 = vmatpush3.bf16.msra.mxu1 (!%p203_p3), %v888_v4  ;;  %v897_v13 = vpack.c.bf16 (!%p203_p3), %v298_v12, %v297_v11  ;;  %v300_v15 = vld [vmem:[%s1262_s1 + $0x48] sm:$0xff] (!%p203_p3)  ;;  %v301_v17 = vld [vmem:[%s1262_s1 + $0x50] sm:$0xff] (!%p203_p3)  ;;  %v302_v18 = vld [vmem:[%s1262_s1 + $0x58] sm:$0xff] (!%p203_p3) }
   0xa   : > { %890 = vmatprep.subr.bf16.mxu0 (!%p203_p3), %v978_v3  ;;  %912 = vmatprep.subr.bf16.mxu1 (!%p203_p3), %v978_v3  ;;  %v900_v16 = vpack.c.bf16 (!%p203_p3), %v300_v15, %v299_v14  ;;  %p242_p4 = scmp.lt.s32.totalorder (!%p203_p3), %s241_s13, 49  ;;  %v903_v19 = vpack.c.bf16 (!%p203_p3), %v302_v18, %v301_v17  ;;  %v303_v20 = vld [vmem:[%s1262_s1 + $0x60] sm:$0xff] (!%p203_p3)  ;;  %v304_v21 = vld [vmem:[%s1262_s1 + $0x68] sm:$0xff] (!%p203_p3)  ;;  %v305_v23 = vld [vmem:[%s1262_s1 + $0x70] sm:$0xff] (!%p203_p3) }
   0xb   : > { %v906_v22 = vpack.c.bf16 (!%p203_p3), %v304_v21, %v303_v20  ;;  %v306_v24 = vld [vmem:[%s1262_s1 + $0x78] sm:$0xff] (!%p203_p3)  ;;  %v1163_v51 = vld [vmem:[%s1263_s2] ss:$0 sm:$0xff] (!%p203_p3) }
   0xc   : > { %v909_v25 = vpack.c.bf16 (!%p203_p3), %v306_v24, %v305_v23  ;;  %v1168_v53 = vld [vmem:[%s1264_s3] ss:$0 sm:$0xff] (!%p203_p3) }
   0xd   : > { %892 = vmatpush3.bf16.msra.mxu0 (!%p203_p3), %v891_v7  ;;  %920 = vmatpush3.bf16.msra.mxu1 (!%p203_p3), %v891_v7 }
   0xe   : > { %893 = vmatprep.subr.bf16.mxu0 %v978_v3  ;;  %913 = vmatprep.subr.bf16.mxu1 %v978_v3  ;;  %s1271_s13 = smov (!%p242_p4, %s241_s13), 49 }
   0xf   : > { %s733_s29 = sshll.u32 %s1271_s13, 3 }
  0x10   : > { %s1087_s6 = scalar_lea.vmem %s1261_s0, %s733_s29  ;;  %s1179_s14 = scalar_lea.vmem %s1265_s4, %s733_s29 }
  0x11   : > { %895 = vmatpush3.bf16.msra.mxu0 %v894_v10  ;;  %921 = vmatpush3.bf16.msra.mxu1 %v894_v10  ;;  %v266_v26 = vld [vmem:[%s1087_s6] sm:$0xff]  ;;  %v279_v27 = vld [vmem:[%s1087_s6 + $0x68] sm:$0xff]  ;;  %v280_v29 = vld [vmem:[%s1087_s6 + $0x70] sm:$0xff] }
  0x12   : > { %896 = vmatprep.subr.bf16.mxu0 %v978_v3  ;;  %914 = vmatprep.subr.bf16.mxu1 %v978_v3  ;;  %v267_v28 = vld [vmem:[%s1087_s6 + $0x8] sm:$0xff]  ;;  %v268_v30 = vld [vmem:[%s1087_s6 + $0x10] sm:$0xff]  ;;  %v281_v31 = vld [vmem:[%s1087_s6 + $0x78] sm:$0xff] }
  0x13   : > { %v269_v32 = vld [vmem:[%s1087_s6 + $0x18] sm:$0xff]  ;;  %v282_v33 = vld [vmem:[%s1087_s6 + $0x80] sm:$0xff]  ;;  %v283_v35 = vld [vmem:[%s1087_s6 + $0x88] sm:$0xff] }
  0x14   : > { %v270_v34 = vld [vmem:[%s1087_s6 + $0x20] sm:$0xff]  ;;  %v271_v36 = vld [vmem:[%s1087_s6 + $0x28] sm:$0xff]  ;;  %v284_v37 = vld [vmem:[%s1087_s6 + $0x90] sm:$0xff] }
  0x15   : > { %898 = vmatpush3.bf16.msra.mxu0 %v897_v13  ;;  %922 = vmatpush3.bf16.msra.mxu1 %v897_v13  ;;  %v272_v38 = vld [vmem:[%s1087_s6 + $0x30] sm:$0xff]  ;;  %v285_v39 = vld [vmem:[%s1087_s6 + $0x98] sm:$0xff]  ;;  %v286_v41 = vld [vmem:[%s1087_s6 + $0xa0] sm:$0xff] }
  0x16   : > { %899 = vmatprep.subr.bf16.mxu0 %v978_v3  ;;  %915 = vmatprep.subr.bf16.mxu1 %v978_v3  ;;  %v273_v40 = vld [vmem:[%s1087_s6 + $0x38] sm:$0xff]  ;;  %v274_v42 = vld [vmem:[%s1087_s6 + $0x40] sm:$0xff]  ;;  %v287_v43 = vld [vmem:[%s1087_s6 + $0xa8] sm:$0xff] }
  0x17   : > { %v275_v44 = vld [vmem:[%s1087_s6 + $0x48] sm:$0xff]  ;;  %v288_v45 = vld [vmem:[%s1087_s6 + $0xb0] sm:$0xff]  ;;  %v289_v47 = vld [vmem:[%s1087_s6 + $0xb8] sm:$0xff] }
  0x18   : > { %v276_v46 = vld [vmem:[%s1087_s6 + $0x50] sm:$0xff]  ;;  %v277_v48 = vld [vmem:[%s1087_s6 + $0x58] sm:$0xff]  ;;  %v290_v49 = vld [vmem:[%s1087_s6 + $0xc0] sm:$0xff] }
  0x19   : > { %901 = vmatpush3.bf16.msra.mxu0 %v900_v16  ;;  %923 = vmatpush3.bf16.msra.mxu1 %v900_v16  ;;  %v278_v50 = vld [vmem:[%s1087_s6 + $0x60] sm:$0xff] }
  0x1a   : > { %902 = vmatprep.subr.bf16.mxu0 %v978_v3  ;;  %916 = vmatprep.subr.bf16.mxu1 %v978_v3 }
  0x1d   : > { %904 = vmatpush3.bf16.msra.mxu0 %v903_v19  ;;  %924 = vmatpush3.bf16.msra.mxu1 %v903_v19 }
  0x1e   : > { %905 = vmatprep.subr.bf16.mxu0 %v978_v3  ;;  %917 = vmatprep.subr.bf16.mxu1 %v978_v3 }
  0x21   : > { %907 = vmatpush3.bf16.msra.mxu0 %v906_v22  ;;  %925 = vmatpush3.bf16.msra.mxu1 %v906_v22 }
  0x22   : > { %908 = vmatprep.subr.bf16.mxu0 %v978_v3  ;;  %918 = vmatprep.subr.bf16.mxu1 %v978_v3 }
  0x25   : > { %910 = vmatpush3.bf16.msra.mxu0 %v909_v25  ;;  %926 = vmatpush3.bf16.msra.mxu1 %v909_v25 }
  0x28   : > { %813 = vmatmul.mubr.f32.vlgmr.msra.gmra.mrb[0].mxu0 %v266_v26  ;;  %852 = vmatmul.mubr.f32.vlgmr.msra.gmra.mrb[0].mxu1 %v279_v27 }
  0x29   : > { %815 = vmatprep.mubr.msk.f32.mxu0 %vm979_vm0, %v980_v6  ;;  %854 = vmatprep.mubr.msk.f32.mxu1 %vm979_vm0, %v980_v6 }
  0x2c   : > { %816 = vmatmul.mubr.f32.gmra.mrb[2].mxu0 %v267_v28  ;;  %855 = vmatmul.mubr.f32.gmra.mrb[2].mxu1 %v280_v29 }
  0x2d   : > { %818 = vmatprep.mubr.msk.f32.mxu0 %vm979_vm0, %v980_v6  ;;  %857 = vmatprep.mubr.msk.f32.mxu1 %vm979_vm0, %v980_v6 }
  0x30   : > { %819 = vmatmul.mubr.f32.gmra.mrb[4].mxu0 %v268_v30  ;;  %858 = vmatmul.mubr.f32.gmra.mrb[4].mxu1 %v281_v31 }
  0x31   : > { %821 = vmatprep.mubr.msk.f32.mxu0 %vm979_vm0, %v980_v6  ;;  %860 = vmatprep.mubr.msk.f32.mxu1 %vm979_vm0, %v980_v6 }
  0x34   : > { %822 = vmatmul.mubr.f32.gmra.mrb[6].mxu0 %v269_v32  ;;  %861 = vmatmul.mubr.f32.gmra.mrb[6].mxu1 %v282_v33 }
  0x35   : > { %824 = vmatprep.mubr.msk.f32.mxu0 %vm979_vm0, %v980_v6  ;;  %863 = vmatprep.mubr.msk.f32.mxu1 %vm979_vm0, %v980_v6 }
  0x38   : > { %825 = vmatmul.mubr.f32.gmra.mrb[8].mxu0 %v270_v34  ;;  %864 = vmatmul.mubr.f32.gmra.mrb[8].mxu1 %v283_v35 }
  0x39   : > { %827 = vmatprep.mubr.msk.f32.mxu0 %vm979_vm0, %v980_v6  ;;  %866 = vmatprep.mubr.msk.f32.mxu1 %vm979_vm0, %v980_v6 }
  0x3c   : > { %828 = vmatmul.mubr.f32.gmra.mrb[10].mxu0 %v271_v36  ;;  %867 = vmatmul.mubr.f32.gmra.mrb[10].mxu1 %v284_v37 }
  0x3d   : > { %830 = vmatprep.mubr.msk.f32.mxu0 %vm979_vm0, %v980_v6  ;;  %869 = vmatprep.mubr.msk.f32.mxu1 %vm979_vm0, %v980_v6 }
  0x40   : > { %831 = vmatmul.mubr.f32.gmra.mrb[12].mxu0 %v272_v38  ;;  %870 = vmatmul.mubr.f32.gmra.mrb[12].mxu1 %v285_v39 }
  0x41   : > { %833 = vmatprep.mubr.msk.f32.mxu0 %vm979_vm0, %v980_v6  ;;  %872 = vmatprep.mubr.msk.f32.mxu1 %vm979_vm0, %v980_v6 }
  0x44   : > { %834 = vmatmul.mubr.f32.gmra.mrb[14].mxu0 %v273_v40  ;;  %873 = vmatmul.mubr.f32.gmra.mrb[14].mxu1 %v286_v41 }
  0x45   : > { %836 = vmatprep.mubr.msk.f32.mxu0 %vm979_vm0, %v980_v6  ;;  %875 = vmatprep.mubr.msk.f32.mxu1 %vm979_vm0, %v980_v6 }
  0x48   : > { %837 = vmatmul.mubr.f32.gmra.mrb[16].mxu0 %v274_v42  ;;  %876 = vmatmul.mubr.f32.gmra.mrb[16].mxu1 %v287_v43 }
  0x49   : > { %839 = vmatprep.mubr.msk.f32.mxu0 %vm979_vm0, %v980_v6  ;;  %878 = vmatprep.mubr.msk.f32.mxu1 %vm979_vm0, %v980_v6 }
  0x4c   : > { %840 = vmatmul.mubr.f32.gmra.mrb[18].mxu0 %v275_v44  ;;  %879 = vmatmul.mubr.f32.gmra.mrb[18].mxu1 %v288_v45 }
  0x4d   : > { %842 = vmatprep.mubr.msk.f32.mxu0 %vm979_vm0, %v980_v6  ;;  %881 = vmatprep.mubr.msk.f32.mxu1 %vm979_vm0, %v980_v6 }
  0x50   : > { %843 = vmatmul.mubr.f32.gmra.mrb[20].mxu0 %v276_v46  ;;  %882 = vmatmul.mubr.f32.gmra.mrb[20].mxu1 %v289_v47 }
  0x51   : > { %845 = vmatprep.mubr.msk.f32.mxu0 %vm979_vm0, %v980_v6  ;;  %884 = vmatprep.mubr.msk.f32.mxu1 %vm979_vm0, %v980_v6 }
  0x54   : > { %846 = vmatmul.mubr.f32.gmra.mrb[22].mxu0 %v277_v48  ;;  %885 = vmatmul.mubr.f32.gmra.mrb[22].mxu1 %v290_v49 }
  0x55   : > { %848 = vmatprep.mubr.msk.f32.mxu0 %vm979_vm0, %v980_v6 }
  0x58   : > { %849 = vmatmul.mubr.f32.gmra.mrb[24].mxu0 %v278_v50 }
  0xfb   : > { %v373_v52 = vpop.f32.mrb[0].mxu0  ;;  %v438_v54 = vpop.f32.mrb[0].mxu1 }
  0xfc   : > { %v504_v55 = vmul.f32 %v1163_v51, %v373_v52  ;;  %v814_v56 = vpop.f32.mrb[1].mxu0  ;;  %v517_v57 = vmul.f32 %v1163_v51, %v438_v54  ;;  %v853_v58 = vpop.f32.mrb[1].mxu1 }
  0xfe   : > { %v536_v59 = vadd.f32 %v1168_v53, %v504_v55  ;;  %v549_v60 = vadd.f32 %v1168_v53, %v517_v57 }
  0xff   : > { %v378_v61 = vpop.f32.mrb[2].mxu0  ;;  %v443_v62 = vpop.f32.mrb[2].mxu1 }
 0x100   : > { %v561_v63 = vmax.f32 %v536_v59, 0.0  ;;  %v574_v0 = vmax.f32 %v549_v60, 0.0  ;;  %v505_v1 = vmul.f32 %v1163_v51, %v378_v61  ;;  %v817_v2 = vpop.f32.mrb[3].mxu0  ;;  %v518_v3 = vmul.f32 %v1163_v51, %v443_v62  ;;  %v856_v4 = vpop.f32.mrb[3].mxu1 }
 0x102   : > { %586 = vst [vmem:[%s1179_s14] sm:$0xff] %v561_v63  ;;  %599 = vst [vmem:[%s1179_s14 + $0x68] sm:$0xff] %v574_v0  ;;  %v537_v5 = vadd.f32 %v1168_v53, %v505_v1  ;;  %v550_v6 = vadd.f32 %v1168_v53, %v518_v3 }
 0x103   : > { %v383_v7 = vpop.f32.mrb[4].mxu0  ;;  %v448_v8 = vpop.f32.mrb[4].mxu1 }
 0x104   : > { %v562_v9 = vmax.f32 %v537_v5, 0.0  ;;  %v575_v10 = vmax.f32 %v550_v6, 0.0  ;;  %v506_v11 = vmul.f32 %v1163_v51, %v383_v7  ;;  %v820_v12 = vpop.f32.mrb[5].mxu0  ;;  %v519_v13 = vmul.f32 %v1163_v51, %v448_v8  ;;  %v859_v14 = vpop.f32.mrb[5].mxu1 }
 0x106   : > { %587 = vst [vmem:[%s1179_s14 + $0x8] sm:$0xff] %v562_v9  ;;  %600 = vst [vmem:[%s1179_s14 + $0x70] sm:$0xff] %v575_v10  ;;  %v538_v15 = vadd.f32 %v1168_v53, %v506_v11  ;;  %v551_v16 = vadd.f32 %v1168_v53, %v519_v13 }
 0x107   : > { %v388_v17 = vpop.f32.mrb[6].mxu0  ;;  %v453_v18 = vpop.f32.mrb[6].mxu1 }
 0x108   : > { %v563_v19 = vmax.f32 %v538_v15, 0.0  ;;  %v576_v20 = vmax.f32 %v551_v16, 0.0  ;;  %v507_v21 = vmul.f32 %v1163_v51, %v388_v17  ;;  %v823_v22 = vpop.f32.mrb[7].mxu0  ;;  %v520_v23 = vmul.f32 %v1163_v51, %v453_v18  ;;  %v862_v24 = vpop.f32.mrb[7].mxu1 }
 0x10a   : > { %588 = vst [vmem:[%s1179_s14 + $0x10] sm:$0xff] %v563_v19  ;;  %601 = vst [vmem:[%s1179_s14 + $0x78] sm:$0xff] %v576_v20  ;;  %v539_v25 = vadd.f32 %v1168_v53, %v507_v21  ;;  %v552_v26 = vadd.f32 %v1168_v53, %v520_v23 }
 0x10b   : > { %v393_v27 = vpop.f32.mrb[8].mxu0  ;;  %v458_v28 = vpop.f32.mrb[8].mxu1 }
 0x10c   : > { %v564_v29 = vmax.f32 %v539_v25, 0.0  ;;  %v577_v30 = vmax.f32 %v552_v26, 0.0  ;;  %v508_v31 = vmul.f32 %v1163_v51, %v393_v27  ;;  %v826_v32 = vpop.f32.mrb[9].mxu0  ;;  %v521_v33 = vmul.f32 %v1163_v51, %v458_v28  ;;  %v865_v34 = vpop.f32.mrb[9].mxu1 }
 0x10e   : > { %589 = vst [vmem:[%s1179_s14 + $0x18] sm:$0xff] %v564_v29  ;;  %602 = vst [vmem:[%s1179_s14 + $0x80] sm:$0xff] %v577_v30  ;;  %v540_v35 = vadd.f32 %v1168_v53, %v508_v31  ;;  %v553_v36 = vadd.f32 %v1168_v53, %v521_v33 }
 0x10f   : > { %v398_v37 = vpop.f32.mrb[10].mxu0  ;;  %v463_v38 = vpop.f32.mrb[10].mxu1 }
 0x110   : > { %v565_v39 = vmax.f32 %v540_v35, 0.0  ;;  %v578_v40 = vmax.f32 %v553_v36, 0.0  ;;  %v509_v41 = vmul.f32 %v1163_v51, %v398_v37  ;;  %v829_v42 = vpop.f32.mrb[11].mxu0  ;;  %v522_v43 = vmul.f32 %v1163_v51, %v463_v38  ;;  %v868_v44 = vpop.f32.mrb[11].mxu1 }
 0x112   : > { %590 = vst [vmem:[%s1179_s14 + $0x20] sm:$0xff] %v565_v39  ;;  %603 = vst [vmem:[%s1179_s14 + $0x88] sm:$0xff] %v578_v40  ;;  %v541_v45 = vadd.f32 %v1168_v53, %v509_v41  ;;  %v554_v46 = vadd.f32 %v1168_v53, %v522_v43 }
 0x113   : > { %v403_v47 = vpop.f32.mrb[12].mxu0  ;;  %v468_v48 = vpop.f32.mrb[12].mxu1 }
 0x114   : > { %v566_v49 = vmax.f32 %v541_v45, 0.0  ;;  %v579_v50 = vmax.f32 %v554_v46, 0.0  ;;  %v510_v52 = vmul.f32 %v1163_v51, %v403_v47  ;;  %v832_v54 = vpop.f32.mrb[13].mxu0  ;;  %v523_v55 = vmul.f32 %v1163_v51, %v468_v48  ;;  %v871_v56 = vpop.f32.mrb[13].mxu1 }
 0x116   : > { %591 = vst [vmem:[%s1179_s14 + $0x28] sm:$0xff] %v566_v49  ;;  %604 = vst [vmem:[%s1179_s14 + $0x90] sm:$0xff] %v579_v50  ;;  %v542_v57 = vadd.f32 %v1168_v53, %v510_v52  ;;  %v555_v58 = vadd.f32 %v1168_v53, %v523_v55 }
 0x117   : > { %v408_v59 = vpop.f32.mrb[14].mxu0  ;;  %v473_v60 = vpop.f32.mrb[14].mxu1 }
 0x118   : > { %v567_v61 = vmax.f32 %v542_v57, 0.0  ;;  %v580_v62 = vmax.f32 %v555_v58, 0.0  ;;  %v511_v63 = vmul.f32 %v1163_v51, %v408_v59  ;;  %v835_v0 = vpop.f32.mrb[15].mxu0  ;;  %v524_v1 = vmul.f32 %v1163_v51, %v473_v60  ;;  %v874_v2 = vpop.f32.mrb[15].mxu1 }
 0x11a   : > { %592 = vst [vmem:[%s1179_s14 + $0x30] sm:$0xff] %v567_v61  ;;  %605 = vst [vmem:[%s1179_s14 + $0x98] sm:$0xff] %v580_v62  ;;  %v543_v3 = vadd.f32 %v1168_v53, %v511_v63  ;;  %v556_v4 = vadd.f32 %v1168_v53, %v524_v1 }
 0x11b   : > { %v413_v5 = vpop.f32.mrb[16].mxu0  ;;  %v478_v6 = vpop.f32.mrb[16].mxu1 }
 0x11c   : > { %v568_v7 = vmax.f32 %v543_v3, 0.0  ;;  %v581_v8 = vmax.f32 %v556_v4, 0.0  ;;  %v512_v9 = vmul.f32 %v1163_v51, %v413_v5  ;;  %v838_v10 = vpop.f32.mrb[17].mxu0  ;;  %v525_v11 = vmul.f32 %v1163_v51, %v478_v6  ;;  %v877_v12 = vpop.f32.mrb[17].mxu1 }
 0x11e   : > { %593 = vst [vmem:[%s1179_s14 + $0x38] sm:$0xff] %v568_v7  ;;  %606 = vst [vmem:[%s1179_s14 + $0xa0] sm:$0xff] %v581_v8  ;;  %v544_v13 = vadd.f32 %v1168_v53, %v512_v9  ;;  %v557_v14 = vadd.f32 %v1168_v53, %v525_v11 }
 0x11f   : > { %v418_v15 = vpop.f32.mrb[18].mxu0  ;;  %v483_v16 = vpop.f32.mrb[18].mxu1 }
 0x120   : > { %v569_v17 = vmax.f32 %v544_v13, 0.0  ;;  %v582_v18 = vmax.f32 %v557_v14, 0.0  ;;  %v513_v19 = vmul.f32 %v1163_v51, %v418_v15  ;;  %v841_v20 = vpop.f32.mrb[19].mxu0  ;;  %v526_v21 = vmul.f32 %v1163_v51, %v483_v16  ;;  %v880_v22 = vpop.f32.mrb[19].mxu1 }
 0x122   : > { %594 = vst [vmem:[%s1179_s14 + $0x40] sm:$0xff] %v569_v17  ;;  %607 = vst [vmem:[%s1179_s14 + $0xa8] sm:$0xff] %v582_v18  ;;  %v545_v23 = vadd.f32 %v1168_v53, %v513_v19  ;;  %v558_v24 = vadd.f32 %v1168_v53, %v526_v21 }
 0x123   : > { %v423_v25 = vpop.f32.mrb[20].mxu0  ;;  %v488_v26 = vpop.f32.mrb[20].mxu1 }
 0x124   : > { %v570_v27 = vmax.f32 %v545_v23, 0.0  ;;  %v583_v28 = vmax.f32 %v558_v24, 0.0  ;;  %v514_v29 = vmul.f32 %v1163_v51, %v423_v25  ;;  %v844_v30 = vpop.f32.mrb[21].mxu0  ;;  %v527_v31 = vmul.f32 %v1163_v51, %v488_v26  ;;  %v883_v32 = vpop.f32.mrb[21].mxu1 }
 0x126   : > { %595 = vst [vmem:[%s1179_s14 + $0x48] sm:$0xff] %v570_v27  ;;  %608 = vst [vmem:[%s1179_s14 + $0xb0] sm:$0xff] %v583_v28  ;;  %v546_v33 = vadd.f32 %v1168_v53, %v514_v29  ;;  %v559_v34 = vadd.f32 %v1168_v53, %v527_v31 }
 0x127   : > { %v428_v35 = vpop.f32.mrb[22].mxu0  ;;  %v493_v36 = vpop.f32.mrb[22].mxu1 }
 0x128   : > { %v571_v37 = vmax.f32 %v546_v33, 0.0  ;;  %v584_v38 = vmax.f32 %v559_v34, 0.0  ;;  %v515_v39 = vmul.f32 %v1163_v51, %v428_v35  ;;  %v847_v40 = vpop.f32.mrb[23].mxu0  ;;  %v528_v41 = vmul.f32 %v1163_v51, %v493_v36  ;;  %v886_v42 = vpop.f32.mrb[23].mxu1 }
 0x12a   : > { %596 = vst [vmem:[%s1179_s14 + $0x50] sm:$0xff] %v571_v37  ;;  %609 = vst [vmem:[%s1179_s14 + $0xb8] sm:$0xff] %v584_v38  ;;  %v547_v43 = vadd.f32 %v1168_v53, %v515_v39  ;;  %v560_v44 = vadd.f32 %v1168_v53, %v528_v41 }
 0x12b   : > { %v433_v45 = vpop.f32.mrb[24].mxu0 }
 0x12c   : > { %v572_v46 = vmax.f32 %v547_v43, 0.0  ;;  %v585_v47 = vmax.f32 %v560_v44, 0.0  ;;  %v516_v48 = vmul.f32 %v1163_v51, %v433_v45  ;;  %v850_v49 = vpop.f32.mrb[25].mxu0 }
 0x12e   : > { %597 = vst [vmem:[%s1179_s14 + $0x58] sm:$0xff] %v572_v46  ;;  %610 = vst [vmem:[%s1179_s14 + $0xc0] sm:$0xff] %v585_v47  ;;  %v548_v50 = vadd.f32 %v1168_v53, %v516_v48 }
 0x130   : > { %v573_v52 = vmax.f32 %v548_v50, 0.0 }
 0x132   : > { %598 = vst [vmem:[%s1179_s14 + $0x60] sm:$0xff] %v573_v52 }
 0x133 PF: > { %s14_s17 = sadd.s32 1, %s976_s17   ;;  %s1266_s15 = smov %s972_s16 }
 0x134   : > { %p11_p5 = scmp.ge.s32.totalorder %s14_s17, 4   ;;  %s1267_s16 = smov %s1269_s18 }
 0x136   :  { %13 = sbr.rel (!%p11_p5) target bundleno = 2 (0x2), region = 75 }

// kernel: convnet3_forward.4
= control target key start
LH: loop header
LB: loop body
LE: loop exit
PB: predicated region body
PF: predicated region fallthrough
CT: control target
= control target key end

     0   :  { %s1470_s15 = smov 0   ;;  %s1472_s16 = smov 0   ;;  %s2053_s0 = inlined_call_operand.vmem [shape: f32[288,640], index: 0, kind: input, shape index: {}]   ;;  %s2054_s1 = inlined_call_operand.vmem [shape: f32[640,128], index: 1, kind: input, shape index: {}]   ;;  %s2055_s2 = inlined_call_operand.vmem [shape: f32[1,128], index: 2, kind: input, shape index: {}]   ;;  %s2056_s3 = inlined_call_operand.vmem [shape: f32[1,128], index: 3, kind: input, shape index: {}]   ;;  %s2057_s4 = inlined_call_operand.vmem [shape: f32[288,128], index: 4, kind: output, shape index: {}]  }
   0x1   :  { %s1474_s17 = smov 0  }
   0x2 LB: > { %s26_s18 = sadd.s32 1, %s1438_s16  ;;  %p1111_p0 = scmp.ge.s32.totalorder %s1442_s17, 1  ;;  %s1442_s17 = sphi %s1474_s17, %s14_s17   ;;  %s1438_s16 = sphi %s1472_s16, %s2059_s16   ;;  %s1434_s15 = sphi %s1470_s15, %s2058_s15  }
   0x3   : > { %p28_p1 = scmp.ge.s32.totalorder %s26_s18, 2  ;;  %p203_p2 = scmp.lt.s32.totalorder %s1442_s17, 3 }
   0x5   : > { %s2061_s18 = smov (%p28_p1, %s26_s18), 0  ;;  %p204_p3 = pnand %p1111_p0, %p203_p2 }
   0x6   : > { %v359_v0 = vld [vmem:[%s2054_s1] sm:$0xff] (!%p204_p3)  ;;  %v360_v1 = vld [vmem:[%s2054_s1 + $0x8] sm:$0xff] (!%p204_p3)  ;;  %v1444_v3 = vmov (!%p204_p3), 0.0|0.0   ;;  %v361_v6 = vld [vmem:[%s2054_s1 + $0x10] sm:$0xff] (!%p204_p3)  ;;  %s243_s9 = smul.u32 (!%p204_p3), 18, %s1434_s15 }
   0x7   : > { %207 = sbr.rel (%p204_p3) target bundleno = 381 (0x17d), region = 36  ;;  %v391_v2 = vld [vmem:[%s2054_s1 + $0x100] sm:$0xff] (!%p204_p3)  ;;  %1211 = vmatprep.subr.bf16.mxu0 (!%p204_p3), %v1444_v3  ;;  %1339 = vmatprep.subr.bf16.mxu1 (!%p204_p3), %v1444_v3  ;;  %v1212_v4 = vpack.c.bf16 (!%p204_p3), %v360_v1, %v359_v0  ;;  %v392_v5 = vld [vmem:[%s2054_s1 + $0x108] sm:$0xff] (!%p204_p3)  ;;  %v362_v7 = vld [vmem:[%s2054_s1 + $0x18] sm:$0xff] (!%p204_p3) }
   0x8   : > { %v1510_v8 = vpack.c.bf16 (!%p204_p3), %v392_v5, %v391_v2  ;;  %v393_v9 = vld [vmem:[%s2054_s1 + $0x110] sm:$0xff] (!%p204_p3)  ;;  %v394_v10 = vld [vmem:[%s2054_s1 + $0x118] sm:$0xff] (!%p204_p3)  ;;  %v1215_v11 = vpack.c.bf16 (!%p204_p3), %v362_v7, %v361_v6  ;;  %v363_v13 = vld [vmem:[%s2054_s1 + $0x20] sm:$0xff] (!%p204_p3)  ;;  %p244_p4 = scmp.lt.s32.totalorder (!%p204_p3), %s243_s9, 35 }
   0x9   : > { %1213 = vmatpush1.bf16.msra.mxu0 (!%p204_p3), %v1212_v4  ;;  %v1521_v12 = vpack.c.bf16 (!%p204_p3), %v394_v10, %v393_v9  ;;  %v364_v14 = vld [vmem:[%s2054_s1 + $0x28] sm:$0xff] (!%p204_p3)  ;;  %v395_v15 = vld [vmem:[%s2054_s1 + $0x120] sm:$0xff] (!%p204_p3)  ;;  %v365_v19 = vld [vmem:[%s2054_s1 + $0x30] sm:$0xff] (!%p204_p3) }
   0xa   : > { %1355 = vmatpush1.bf16.msra.mxu1 (!%p204_p3), %v1510_v8  ;;  %1214 = vmatprep.subr.bf16.mxu0 (!%p204_p3), %v1444_v3  ;;  %v396_v16 = vld [vmem:[%s2054_s1 + $0x128] sm:$0xff] (!%p204_p3)  ;;  %v1218_v17 = vpack.c.bf16 (!%p204_p3), %v364_v14, %v363_v13  ;;  %v366_v20 = vld [vmem:[%s2054_s1 + $0x38] sm:$0xff] (!%p204_p3)  ;;  %v397_v21 = vld [vmem:[%s2054_s1 + $0x130] sm:$0xff] (!%p204_p3) }
   0xb   : > { %1340 = vmatprep.subr.bf16.mxu1 (!%p204_p3), %v1444_v3  ;;  %v1538_v18 = vpack.c.bf16 (!%p204_p3), %v396_v16, %v395_v15  ;;  %v398_v22 = vld [vmem:[%s2054_s1 + $0x138] sm:$0xff] (!%p204_p3)  ;;  %v1221_v23 = vpack.c.bf16 (!%p204_p3), %v366_v20, %v365_v19  ;;  %v367_v25 = vld [vmem:[%s2054_s1 + $0x40] sm:$0xff] (!%p204_p3)  ;;  %v368_v26 = vld [vmem:[%s2054_s1 + $0x48] sm:$0xff] (!%p204_p3) }
   0xc   : > { %v1557_v24 = vpack.c.bf16 (!%p204_p3), %v398_v22, %v397_v21  ;;  %v399_v27 = vld [vmem:[%s2054_s1 + $0x140] sm:$0xff] (!%p204_p3)  ;;  %v400_v28 = vld [vmem:[%s2054_s1 + $0x148] sm:$0xff] (!%p204_p3)  ;;  %v1224_v29 = vpack.c.bf16 (!%p204_p3), %v368_v26, %v367_v25  ;;  %v369_v31 = vld [vmem:[%s2054_s1 + $0x50] sm:$0xff] (!%p204_p3) }
   0xd   : > { %1216 = vmatpush1.bf16.msra.mxu0 (!%p204_p3), %v1215_v11  ;;  %v1575_v30 = vpack.c.bf16 (!%p204_p3), %v400_v28, %v399_v27  ;;  %v370_v32 = vld [vmem:[%s2054_s1 + $0x58] sm:$0xff] (!%p204_p3)  ;;  %v401_v33 = vld [vmem:[%s2054_s1 + $0x150] sm:$0xff] (!%p204_p3)  ;;  %v371_v37 = vld [vmem:[%s2054_s1 + $0x60] sm:$0xff] (!%p204_p3) }
   0xe   : > { %1356 = vmatpush1.bf16.msra.mxu1 %v1521_v12  ;;  %1217 = vmatprep.subr.bf16.mxu0 %v1444_v3  ;;  %s2063_s9 = smov (!%p244_p4, %s243_s9), 35  ;;  %v402_v34 = vld [vmem:[%s2054_s1 + $0x158] sm:$0xff]  ;;  %v1227_v35 = vpack.c.bf16 %v370_v32, %v369_v31  ;;  %v372_v38 = vld [vmem:[%s2054_s1 + $0x68] sm:$0xff]  ;;  %v403_v39 = vld [vmem:[%s2054_s1 + $0x160] sm:$0xff] }
   0xf   : > { %1341 = vmatprep.subr.bf16.mxu1 %v1444_v3  ;;  %s1394_s12 = smul.u32 40, %s2063_s9  ;;  %v1597_v36 = vpack.c.bf16 %v402_v34, %v401_v33  ;;  %v404_v40 = vld [vmem:[%s2054_s1 + $0x168] sm:$0xff]  ;;  %v1230_v43 = vpack.c.bf16 %v372_v38, %v371_v37  ;;  %v373_v45 = vld [vmem:[%s2054_s1 + $0x70] sm:$0xff]  ;;  %v374_v46 = vld [vmem:[%s2054_s1 + $0x78] sm:$0xff] }
  0x10   : > { %v1616_v44 = vpack.c.bf16 %v404_v40, %v403_v39  ;;  %v405_v47 = vld [vmem:[%s2054_s1 + $0x170] sm:$0xff]  ;;  %v406_v48 = vld [vmem:[%s2054_s1 + $0x178] sm:$0xff]  ;;  %v1233_v49 = vpack.c.bf16 %v374_v46, %v373_v45  ;;  %v375_v51 = vld [vmem:[%s2054_s1 + $0x80] sm:$0xff] }
  0x11   : > { %1219 = vmatpush1.bf16.msra.mxu0 %v1218_v17  ;;  %s1593_s26 = scalar_lea.vmem %s2053_s0, %s1394_s12  ;;  %v1633_v50 = vpack.c.bf16 %v406_v48, %v405_v47  ;;  %v376_v52 = vld [vmem:[%s2054_s1 + $0x88] sm:$0xff]  ;;  %v407_v53 = vld [vmem:[%s2054_s1 + $0x180] sm:$0xff]  ;;  %v377_v57 = vld [vmem:[%s2054_s1 + $0x90] sm:$0xff]  ;;  %s1113_s12 = sshll.u32 %s2063_s9, 3 }
  0x12   : > { %1357 = vmatpush1.bf16.msra.mxu1 %v1538_v18  ;;  %1220 = vmatprep.subr.bf16.mxu0 %v1444_v3  ;;  %v270_v41 = vld [vmem:[%s1593_s26 + $0x8] sm:$0xff]  ;;  %v297_v42 = vld [vmem:[%s1593_s26 + $0xe0] sm:$0xff]  ;;  %v1236_v55 = vpack.c.bf16 %v376_v52, %v375_v51  ;;  %v378_v58 = vld [vmem:[%s2054_s1 + $0x98] sm:$0xff]  ;;  %s1977_s15 = scalar_lea.vmem %s2057_s4, %s1113_s12 }
  0x13   : > { %1342 = vmatprep.subr.bf16.mxu1 %v1444_v3  ;;  %503 = vmatprep.mubr.f32.mxu0 %v270_v41  ;;  %v408_v54 = vld [vmem:[%s2054_s1 + $0x188] sm:$0xff]  ;;  %v409_v59 = vld [vmem:[%s2054_s1 + $0x190] sm:$0xff]  ;;  %v410_v60 = vld [vmem:[%s2054_s1 + $0x198] sm:$0xff]  ;;  %v1239_v61 = vpack.c.bf16 %v378_v58, %v377_v57 }
  0x14   : > { %683 = vmatprep.mubr.f32.mxu1 %v297_v42  ;;  %v1650_v56 = vpack.c.bf16 %v408_v54, %v407_v53  ;;  %v1667_v62 = vpack.c.bf16 %v410_v60, %v409_v59  ;;  %v379_v63 = vld [vmem:[%s2054_s1 + $0xa0] sm:$0xff]  ;;  %v380_v0 = vld [vmem:[%s2054_s1 + $0xa8] sm:$0xff]  ;;  %v381_v6 = vld [vmem:[%s2054_s1 + $0xb0] sm:$0xff] }
  0x15   : > { %1222 = vmatpush1.bf16.msra.mxu0 %v1221_v23  ;;  %v411_v1 = vld [vmem:[%s2054_s1 + $0x1a0] sm:$0xff]  ;;  %v412_v2 = vld [vmem:[%s2054_s1 + $0x1a8] sm:$0xff]  ;;  %v1242_v4 = vpack.c.bf16 %v380_v0, %v379_v63  ;;  %v382_v7 = vld [vmem:[%s2054_s1 + $0xb8] sm:$0xff] }
  0x16   : > { %1358 = vmatpush1.bf16.msra.mxu1 %v1557_v24  ;;  %1223 = vmatprep.subr.bf16.mxu0 %v1444_v3  ;;  %v1684_v5 = vpack.c.bf16 %v412_v2, %v411_v1  ;;  %v413_v9 = vld [vmem:[%s2054_s1 + $0x1b0] sm:$0xff]  ;;  %v414_v10 = vld [vmem:[%s2054_s1 + $0x1b8] sm:$0xff]  ;;  %v1245_v11 = vpack.c.bf16 %v382_v7, %v381_v6  ;;  %v383_v14 = vld [vmem:[%s2054_s1 + $0xc0] sm:$0xff] }
  0x17   : > { %1343 = vmatprep.subr.bf16.mxu1 %v1444_v3  ;;  %v1701_v13 = vpack.c.bf16 %v414_v10, %v413_v9  ;;  %v384_v15 = vld [vmem:[%s2054_s1 + $0xc8] sm:$0xff]  ;;  %v415_v16 = vld [vmem:[%s2054_s1 + $0x1c0] sm:$0xff]  ;;  %v385_v21 = vld [vmem:[%s2054_s1 + $0xd0] sm:$0xff] }
  0x18   : > { %v416_v17 = vld [vmem:[%s2054_s1 + $0x1c8] sm:$0xff]  ;;  %v1248_v19 = vpack.c.bf16 %v384_v15, %v383_v14  ;;  %v386_v22 = vld [vmem:[%s2054_s1 + $0xd8] sm:$0xff]  ;;  %v417_v23 = vld [vmem:[%s2054_s1 + $0x1d0] sm:$0xff] }
  0x19   : > { %1225 = vmatpush1.bf16.msra.mxu0 %v1224_v29  ;;  %v1718_v20 = vpack.c.bf16 %v416_v17, %v415_v16  ;;  %v418_v25 = vld [vmem:[%s2054_s1 + $0x1d8] sm:$0xff]  ;;  %v1251_v26 = vpack.c.bf16 %v386_v22, %v385_v21  ;;  %v387_v28 = vld [vmem:[%s2054_s1 + $0xe0] sm:$0xff]  ;;  %v388_v29 = vld [vmem:[%s2054_s1 + $0xe8] sm:$0xff] }
  0x1a   : > { %1359 = vmatpush1.bf16.msra.mxu1 %v1575_v30  ;;  %1226 = vmatprep.subr.bf16.mxu0 %v1444_v3  ;;  %v1735_v27 = vpack.c.bf16 %v418_v25, %v417_v23  ;;  %v419_v31 = vld [vmem:[%s2054_s1 + $0x1e0] sm:$0xff]  ;;  %v420_v32 = vld [vmem:[%s2054_s1 + $0x1e8] sm:$0xff]  ;;  %v1254_v33 = vpack.c.bf16 %v388_v29, %v387_v28  ;;  %v390_v37 = vld [vmem:[%s2054_s1 + $0xf8] sm:$0xff] }
  0x1b   : > { %1344 = vmatprep.subr.bf16.mxu1 %v1444_v3  ;;  %v1752_v34 = vpack.c.bf16 %v420_v32, %v419_v31  ;;  %v421_v38 = vld [vmem:[%s2054_s1 + $0x1f0] sm:$0xff]  ;;  %v422_v39 = vld [vmem:[%s2054_s1 + $0x1f8] sm:$0xff]  ;;  %v423_v40 = vld [vmem:[%s2054_s1 + $0x200] sm:$0xff] }
  0x1c   : > { %v424_v41 = vld [vmem:[%s2054_s1 + $0x208] sm:$0xff]  ;;  %v269_v46 = vld [vmem:[%s1593_s26] sm:$0xff]  ;;  %v425_v47 = vld [vmem:[%s2054_s1 + $0x210] sm:$0xff] }
  0x1d   : > { %1228 = vmatpush1.bf16.msra.mxu0 %v1227_v35  ;;  %v389_v35 = vld [vmem:[%s2054_s1 + $0xf0] sm:$0xff]  ;;  %v1307_v45 = vpack.c.bf16 %v424_v41, %v423_v40  ;;  %v426_v48 = vld [vmem:[%s2054_s1 + $0x218] sm:$0xff]  ;;  %v302_v52 = vld [vmem:[%s1593_s26 + $0x108] sm:$0xff] }
  0x1e   : > { %1360 = vmatpush1.bf16.msra.mxu1 %v1597_v36  ;;  %1229 = vmatprep.subr.bf16.mxu0 %v1444_v3  ;;  %v1257_v42 = vpack.c.bf16 %v390_v37, %v389_v35  ;;  %v275_v51 = vld [vmem:[%s1593_s26 + $0x30] sm:$0xff]  ;;  %v1311_v53 = vpack.c.bf16 %v426_v48, %v425_v47  ;;  %v274_v54 = vld [vmem:[%s1593_s26 + $0x28] sm:$0xff]  ;;  %v301_v58 = vld [vmem:[%s1593_s26 + $0x100] sm:$0xff] }
  0x1f   : > { %1345 = vmatprep.subr.bf16.mxu1 %v1444_v3  ;;  %v428_v57 = vld [vmem:[%s2054_s1 + $0x228] sm:$0xff]  ;;  %v307_v59 = vld [vmem:[%s1593_s26 + $0x130] sm:$0xff]  ;;  %v430_v0 = vld [vmem:[%s2054_s1 + $0x238] sm:$0xff] }
  0x20   : > { %v429_v63 = vld [vmem:[%s2054_s1 + $0x230] sm:$0xff]  ;;  %v306_v1 = vld [vmem:[%s1593_s26 + $0x128] sm:$0xff]  ;;  %v285_v2 = vld [vmem:[%s1593_s26 + $0x80] sm:$0xff] }
  0x21   : > { %1231 = vmatpush1.bf16.msra.mxu0 %v1230_v43  ;;  %v1775_v43 = vpack.c.bf16 %v422_v39, %v421_v38  ;;  %v284_v6 = vld [vmem:[%s1593_s26 + $0x78] sm:$0xff]  ;;  %v431_v7 = vld [vmem:[%s2054_s1 + $0x240] sm:$0xff]  ;;  %v432_v9 = vld [vmem:[%s2054_s1 + $0x248] sm:$0xff] }
  0x22   : > { %1361 = vmatpush1.bf16.msra.mxu1 %v1616_v44  ;;  %1232 = vmatprep.subr.bf16.mxu0 %v1444_v3  ;;  %v311_v10 = vld [vmem:[%s1593_s26 + $0x150] sm:$0xff]  ;;  %v1323_v14 = vpack.c.bf16 %v432_v9, %v431_v7  ;;  %v289_v15 = vld [vmem:[%s1593_s26 + $0xa0] sm:$0xff]  ;;  %v434_v17 = vld [vmem:[%s2054_s1 + $0x258] sm:$0xff] }
  0x23   : > { %1346 = vmatprep.subr.bf16.mxu1 %v1444_v3  ;;  %v433_v16 = vld [vmem:[%s2054_s1 + $0x250] sm:$0xff]  ;;  %v322_v22 = vld [vmem:[%s1593_s26 + $0x1a8] sm:$0xff]  ;;  %v321_v28 = vld [vmem:[%s1593_s26 + $0x1a0] sm:$0xff] }
  0x24   : > { %v295_v21 = vld [vmem:[%s1593_s26 + $0xd0] sm:$0xff]  ;;  %v1327_v23 = vpack.c.bf16 %v434_v17, %v433_v16  ;;  %v294_v25 = vld [vmem:[%s1593_s26 + $0xc8] sm:$0xff]  ;;  %v300_v29 = vld [vmem:[%s1593_s26 + $0xf8] sm:$0xff] }
  0x25   : > { %1234 = vmatpush1.bf16.msra.mxu0 %v1233_v49  ;;  %v296_v49 = vld [vmem:[%s1593_s26 + $0xd8] sm:$0xff]  ;;  %v327_v31 = vld [vmem:[%s1593_s26 + $0x1d0] sm:$0xff]  ;;  %v326_v37 = vld [vmem:[%s1593_s26 + $0x1c8] sm:$0xff] }
  0x26   : > { %1362 = vmatpush1.bf16.msra.mxu1 %v1633_v50  ;;  %1235 = vmatprep.subr.bf16.mxu0 %v1444_v3  ;;  %v438_v35 = vld [vmem:[%s2054_s1 + $0x278] sm:$0xff]  ;;  %v305_v38 = vld [vmem:[%s1593_s26 + $0x120] sm:$0xff]  ;;  %v342_v48 = vld [vmem:[%s1593_s26 + $0x248] sm:$0xff] }
  0x27   : > { %1347 = vmatprep.subr.bf16.mxu1 %v1444_v3  ;;  %v332_v39 = vld [vmem:[%s1593_s26 + $0x1f8] sm:$0xff]  ;;  %v298_v7 = vld [vmem:[%s1593_s26 + $0xe8] sm:$0xff]  ;;  %v323_v16 = vld [vmem:[%s1593_s26 + $0x1b0] sm:$0xff] }
  0x28   : > { %v304_v41 = vld [vmem:[%s1593_s26 + $0x118] sm:$0xff]  ;;  %v350_v9 = vld [vmem:[%s1593_s26 + $0x288] sm:$0xff]  ;;  %v271_v17 = vld [vmem:[%s1593_s26 + $0x10] sm:$0xff] }
  0x29   : > { %1237 = vmatpush1.bf16.msra.mxu0 %v1236_v55  ;;  %v427_v55 = vld [vmem:[%s2054_s1 + $0x220] sm:$0xff]  ;;  %v336_v47 = vld [vmem:[%s1593_s26 + $0x218] sm:$0xff] }
  0x2a   : > { %1363 = vmatpush1.bf16.msra.mxu1 %v1650_v56  ;;  %1238 = vmatprep.subr.bf16.mxu0 %v1444_v3  ;;  %v1315_v60 = vpack.c.bf16 %v428_v57, %v427_v55  ;;  %v325_v55 = vld [vmem:[%s1593_s26 + $0x1c0] sm:$0xff]  ;;  %v352_v57 = vld [vmem:[%s1593_s26 + $0x298] sm:$0xff] }
  0x2b   : > { %1348 = vmatprep.subr.bf16.mxu1 %v1444_v3 }
  0x2d   : > { %1240 = vmatpush1.bf16.msra.mxu0 %v1239_v61  ;;  %v279_v61 = vld [vmem:[%s1593_s26 + $0x50] sm:$0xff] }
  0x2e   : > { %1364 = vmatpush1.bf16.msra.mxu1 %v1667_v62  ;;  %1241 = vmatprep.subr.bf16.mxu0 %v1444_v3 }
  0x2f   : > { %1349 = vmatprep.subr.bf16.mxu1 %v1444_v3 }
  0x31   : > { %1243 = vmatpush1.bf16.msra.mxu0 %v1242_v4  ;;  %v1319_v4 = vpack.c.bf16 %v430_v0, %v429_v63  ;;  %v273_v63 = vld [vmem:[%s1593_s26 + $0x20] sm:$0xff]  ;;  %v278_v0 = vld [vmem:[%s1593_s26 + $0x48] sm:$0xff] }
  0x32   : > { %1365 = vmatpush1.bf16.msra.mxu1 %v1684_v5  ;;  %1244 = vmatprep.subr.bf16.mxu0 %v1444_v3 }
  0x33   : > { %1350 = vmatprep.subr.bf16.mxu1 %v1444_v3 }
  0x35   : > { %1246 = vmatpush1.bf16.msra.mxu0 %v1245_v11  ;;  %v290_v11 = vld [vmem:[%s1593_s26 + $0xa8] sm:$0xff] }
  0x36   : > { %1366 = vmatpush1.bf16.msra.mxu1 %v1701_v13  ;;  %1247 = vmatprep.subr.bf16.mxu0 %v1444_v3 }
  0x37   : > { %1351 = vmatprep.subr.bf16.mxu1 %v1444_v3 }
  0x39   : > { %1249 = vmatpush1.bf16.msra.mxu0 %v1248_v19  ;;  %v316_v19 = vld [vmem:[%s1593_s26 + $0x178] sm:$0xff] }
  0x3a   : > { %1367 = vmatpush1.bf16.msra.mxu1 %v1718_v20  ;;  %1250 = vmatprep.subr.bf16.mxu0 %v1444_v3 }
  0x3b   : > { %1352 = vmatprep.subr.bf16.mxu1 %v1444_v3 }
  0x3d   : > { %1252 = vmatpush1.bf16.msra.mxu0 %v1251_v26  ;;  %v436_v26 = vld [vmem:[%s2054_s1 + $0x268] sm:$0xff] }
  0x3e   : > { %1368 = vmatpush1.bf16.msra.mxu1 %v1735_v27  ;;  %1253 = vmatprep.subr.bf16.mxu0 %v1444_v3 }
  0x3f   : > { %1353 = vmatprep.subr.bf16.mxu1 %v1444_v3 }
  0x41   : > { %1255 = vmatpush1.bf16.msra.mxu0 %v1254_v33  ;;  %v299_v33 = vld [vmem:[%s1593_s26 + $0xf0] sm:$0xff] }
  0x42   : > { %1369 = vmatpush1.bf16.msra.mxu1 %v1752_v34  ;;  %1256 = vmatprep.subr.bf16.mxu0 %v1444_v3 }
  0x43   : > { %1354 = vmatprep.subr.bf16.mxu1 %v1444_v3 }
  0x45   : > { %1258 = vmatpush1.bf16.msra.mxu0 %v1257_v42  ;;  %v310_v42 = vld [vmem:[%s1593_s26 + $0x148] sm:$0xff] }
  0x46   : > { %1370 = vmatpush1.bf16.msra.mxu1 %v1775_v43  ;;  %1259 = vmatprep.subr.bf16.mxu0 %v1444_v3 }
  0x47   : > { %1308 = vmatprep.subr.bf16.mxu1 %v1307_v45 }
  0x48   : > { %504 = vmatmul.mubr.f32.vlgmr.msra.gmra.mrb[0].mxu0 %v269_v46  ;;  %v309_v46 = vld [vmem:[%s1593_s26 + $0x140] sm:$0xff] }
  0x49   : > { %684 = vmatmul.mubr.f32.vlgmr.msra.gmra.mrb[0].mxu1 %v296_v49  ;;  %1261 = vmatpush1.bf16.msra.mxu0 %v1510_v8  ;;  %v280_v8 = vld [vmem:[%s1593_s26 + $0x58] sm:$0xff]  ;;  %v314_v49 = vld [vmem:[%s1593_s26 + $0x168] sm:$0xff] }
  0x4a   : > { %508 = vmatprep.mubr.f32.mxu0 %v275_v51  ;;  %688 = vmatprep.mubr.f32.mxu1 %v302_v52  ;;  %v341_v51 = vld [vmem:[%s1593_s26 + $0x240] sm:$0xff]  ;;  %v320_v52 = vld [vmem:[%s1593_s26 + $0x198] sm:$0xff] }
  0x4b   : > { %1310 = vmatpush3.bf16.msra.mxu1 %v1307_v45  ;;  %1262 = vmatprep.subr.bf16.mxu0 %v1444_v3  ;;  %v337_v45 = vld [vmem:[%s1593_s26 + $0x220] sm:$0xff] }
  0x4c   : > { %509 = vmatmul.mubr.f32.gmra.mrb[2].mxu0 %v274_v54  ;;  %1312 = vmatprep.subr.bf16.mxu1 %v1311_v53  ;;  %v346_v54 = vld [vmem:[%s1593_s26 + $0x268] sm:$0xff] }
  0x4d   : > { %689 = vmatmul.mubr.f32.gmra.mrb[2].mxu1 %v301_v58  ;;  %1264 = vmatpush1.bf16.msra.mxu0 %v1521_v12  ;;  %v312_v12 = vld [vmem:[%s1593_s26 + $0x158] sm:$0xff]  ;;  %v351_v58 = vld [vmem:[%s1593_s26 + $0x290] sm:$0xff] }
  0x4e   : > { %513 = vmatprep.mubr.f32.mxu0 %v280_v8  ;;  %693 = vmatprep.mubr.f32.mxu1 %v307_v59  ;;  %v330_v8 = vld [vmem:[%s1593_s26 + $0x1e8] sm:$0xff]  ;;  %v357_v59 = vld [vmem:[%s1593_s26 + $0x2c0] sm:$0xff] }
  0x4f   : > { %1265 = vmatprep.subr.bf16.mxu0 %v1444_v3  ;;  %1314 = vmatpush3.bf16.msra.mxu1 %v1311_v53  ;;  %v319_v53 = vld [vmem:[%s1593_s26 + $0x190] sm:$0xff] }
  0x50   : > { %514 = vmatmul.mubr.f32.gmra.mrb[4].mxu0 %v279_v61  ;;  %1316 = vmatprep.subr.bf16.mxu1 %v1315_v60  ;;  %v335_v61 = vld [vmem:[%s1593_s26 + $0x210] sm:$0xff] }
  0x51   : > { %694 = vmatmul.mubr.f32.gmra.mrb[4].mxu1 %v306_v1  ;;  %1267 = vmatpush1.bf16.msra.mxu0 %v1538_v18  ;;  %v317_v18 = vld [vmem:[%s1593_s26 + $0x180] sm:$0xff]  ;;  %v340_v1 = vld [vmem:[%s1593_s26 + $0x238] sm:$0xff] }
  0x52   : > { %518 = vmatprep.mubr.f32.mxu0 %v285_v2  ;;  %698 = vmatprep.mubr.f32.mxu1 %v312_v12  ;;  %v283_v2 = vld [vmem:[%s1593_s26 + $0x70] sm:$0xff]  ;;  %v288_v12 = vld [vmem:[%s1593_s26 + $0x98] sm:$0xff] }
  0x53   : > { %1268 = vmatprep.subr.bf16.mxu0 %v1444_v3  ;;  %1318 = vmatpush3.bf16.msra.mxu1 %v1315_v60  ;;  %v356_v60 = vld [vmem:[%s1593_s26 + $0x2b8] sm:$0xff] }
  0x54   : > { %519 = vmatmul.mubr.f32.gmra.mrb[6].mxu0 %v284_v6  ;;  %1320 = vmatprep.subr.bf16.mxu1 %v1319_v4  ;;  %v293_v6 = vld [vmem:[%s1593_s26 + $0xc0] sm:$0xff] }
  0x55   : > { %699 = vmatmul.mubr.f32.gmra.mrb[6].mxu1 %v311_v10  ;;  %523 = vmatprep.mubr.f32.mxu0 %v290_v11  ;;  %v303_v10 = vld [vmem:[%s1593_s26 + $0x110] sm:$0xff]  ;;  %v308_v11 = vld [vmem:[%s1593_s26 + $0x138] sm:$0xff] }
  0x56   : > { %1270 = vmatpush1.bf16.msra.mxu0 %v1557_v24  ;;  %703 = vmatprep.mubr.f32.mxu1 %v317_v18  ;;  %v435_v24 = vld [vmem:[%s2054_s1 + $0x260] sm:$0xff]  ;;  %v355_v18 = vld [vmem:[%s1593_s26 + $0x2b0] sm:$0xff] }
  0x57   : > { %1271 = vmatprep.subr.bf16.mxu0 %v1444_v3  ;;  %1322 = vmatpush3.bf16.msra.mxu1 %v1319_v4  ;;  %v1331_v32 = vpack.c.bf16 %v436_v26, %v435_v24  ;;  %v345_v4 = vld [vmem:[%s1593_s26 + $0x260] sm:$0xff]  ;;  %v343_v24 = vld [vmem:[%s1593_s26 + $0x250] sm:$0xff] }
  0x58   : > { %524 = vmatmul.mubr.f32.gmra.mrb[8].mxu0 %v289_v15  ;;  %1324 = vmatprep.subr.bf16.mxu1 %v1323_v14  ;;  %v272_v15 = vld [vmem:[%s1593_s26 + $0x18] sm:$0xff]  ;;  %v281_v26 = vld [vmem:[%s1593_s26 + $0x60] sm:$0xff] }
  0x59   : > { %704 = vmatmul.mubr.f32.gmra.mrb[8].mxu1 %v316_v19  ;;  %528 = vmatprep.mubr.f32.mxu0 %v295_v21  ;;  %v277_v19 = vld [vmem:[%s1593_s26 + $0x40] sm:$0xff] }
  0x5a   : > { %1273 = vmatpush1.bf16.msra.mxu0 %v1575_v30  ;;  %708 = vmatprep.mubr.f32.mxu1 %v322_v22  ;;  %v437_v30 = vld [vmem:[%s2054_s1 + $0x270] sm:$0xff]  ;;  %v333_v21 = vld [vmem:[%s1593_s26 + $0x200] sm:$0xff]  ;;  %v276_v22 = vld [vmem:[%s1593_s26 + $0x38] sm:$0xff] }
  0x5b   : > { %1274 = vmatprep.subr.bf16.mxu0 %v1444_v3  ;;  %1326 = vmatpush3.bf16.msra.mxu1 %v1323_v14  ;;  %v1335_v40 = vpack.c.bf16 %v438_v35, %v437_v30  ;;  %v313_v14 = vld [vmem:[%s1593_s26 + $0x160] sm:$0xff]  ;;  %v292_v30 = vld [vmem:[%s1593_s26 + $0xb8] sm:$0xff]  ;;  %v291_v35 = vld [vmem:[%s1593_s26 + $0xb0] sm:$0xff] }
  0x5c   : > { %529 = vmatmul.mubr.f32.gmra.mrb[10].mxu0 %v294_v25  ;;  %1328 = vmatprep.subr.bf16.mxu1 %v1327_v23  ;;  %v282_v25 = vld [vmem:[%s1593_s26 + $0x68] sm:$0xff] }
  0x5d   : > { %709 = vmatmul.mubr.f32.gmra.mrb[10].mxu1 %v321_v28  ;;  %533 = vmatprep.mubr.f32.mxu0 %v300_v29  ;;  %v348_v28 = vld [vmem:[%s1593_s26 + $0x278] sm:$0xff]  ;;  %v287_v29 = vld [vmem:[%s1593_s26 + $0x90] sm:$0xff] }
  0x5e   : > { %713 = vmatprep.mubr.f32.mxu1 %v327_v31  ;;  %1276 = vmatpush1.bf16.msra.mxu0 %v1597_v36  ;;  %v331_v36 = vld [vmem:[%s1593_s26 + $0x1f0] sm:$0xff]  ;;  %v353_v31 = vld [vmem:[%s1593_s26 + $0x2a0] sm:$0xff] }
  0x5f   : > { %1277 = vmatprep.subr.bf16.mxu0 %v1444_v3  ;;  %1330 = vmatpush3.bf16.msra.mxu1 %v1327_v23  ;;  %v338_v23 = vld [vmem:[%s1593_s26 + $0x228] sm:$0xff] }
  0x60   : > { %534 = vmatmul.mubr.f32.gmra.mrb[12].mxu0 %v299_v33  ;;  %1332 = vmatprep.subr.bf16.mxu1 %v1331_v32  ;;  %v358_v33 = vld [vmem:[%s1593_s26 + $0x2c8] sm:$0xff] }
  0x61   : > { %714 = vmatmul.mubr.f32.gmra.mrb[12].mxu1 %v326_v37  ;;  %538 = vmatprep.mubr.f32.mxu0 %v305_v38 }
  0x62   : > { %718 = vmatprep.mubr.f32.mxu1 %v332_v39  ;;  %1279 = vmatpush1.bf16.msra.mxu0 %v1616_v44  ;;  %v315_v44 = vld [vmem:[%s1593_s26 + $0x170] sm:$0xff] }
  0x63   : > { %1280 = vmatprep.subr.bf16.mxu0 %v1444_v3  ;;  %1334 = vmatpush3.bf16.msra.mxu1 %v1331_v32  ;;  %v286_v32 = vld [vmem:[%s1593_s26 + $0x88] sm:$0xff] }
  0x64   : > { %539 = vmatmul.mubr.f32.gmra.mrb[14].mxu0 %v304_v41  ;;  %1336 = vmatprep.subr.bf16.mxu1 %v1335_v40 }
  0x65   : > { %719 = vmatmul.mubr.f32.gmra.mrb[14].mxu1 %v331_v36  ;;  %543 = vmatprep.mubr.f32.mxu0 %v310_v42 }
  0x66   : > { %723 = vmatprep.mubr.f32.mxu1 %v337_v45  ;;  %1282 = vmatpush1.bf16.msra.mxu0 %v1633_v50  ;;  %v347_v50 = vld [vmem:[%s1593_s26 + $0x270] sm:$0xff] }
  0x67   : > { %1283 = vmatprep.subr.bf16.mxu0 %v1444_v3  ;;  %1338 = vmatpush3.bf16.msra.mxu1 %v1335_v40 }
  0x68   : > { %544 = vmatmul.mubr.f32.gmra.mrb[16].mxu0 %v309_v46 }
  0x69   : > { %724 = vmatmul.mubr.f32.gmra.mrb[16].mxu1 %v336_v47  ;;  %548 = vmatprep.mubr.f32.mxu0 %v315_v44 }
  0x6a   : > { %728 = vmatprep.mubr.f32.mxu1 %v342_v48  ;;  %1285 = vmatpush1.bf16.msra.mxu0 %v1650_v56  ;;  %v324_v56 = vld [vmem:[%s1593_s26 + $0x1b8] sm:$0xff] }
  0x6b   : > { %1286 = vmatprep.subr.bf16.mxu0 %v1444_v3 }
  0x6c   : > { %549 = vmatmul.mubr.f32.gmra.mrb[18].mxu0 %v314_v49 }
  0x6d   : > { %729 = vmatmul.mubr.f32.gmra.mrb[18].mxu1 %v341_v51  ;;  %553 = vmatprep.mubr.f32.mxu0 %v320_v52 }
  0x6e   : > { %733 = vmatprep.mubr.f32.mxu1 %v347_v50  ;;  %1288 = vmatpush1.bf16.msra.mxu0 %v1667_v62  ;;  %v329_v62 = vld [vmem:[%s1593_s26 + $0x1e0] sm:$0xff] }
  0x6f   : > { %1289 = vmatprep.subr.bf16.mxu0 %v1444_v3 }
  0x70   : > { %554 = vmatmul.mubr.f32.gmra.mrb[20].mxu0 %v319_v53 }
  0x71   : > { %734 = vmatmul.mubr.f32.gmra.mrb[20].mxu1 %v346_v54  ;;  %558 = vmatprep.mubr.f32.mxu0 %v325_v55 }
  0x72   : > { %738 = vmatprep.mubr.f32.mxu1 %v352_v57  ;;  %1291 = vmatpush1.bf16.msra.mxu0 %v1684_v5  ;;  %v334_v5 = vld [vmem:[%s1593_s26 + $0x208] sm:$0xff] }
  0x73   : > { %1292 = vmatprep.subr.bf16.mxu0 %v1444_v3 }
  0x74   : > { %559 = vmatmul.mubr.f32.gmra.mrb[22].mxu0 %v324_v56 }
  0x75   : > { %739 = vmatmul.mubr.f32.gmra.mrb[22].mxu1 %v351_v58  ;;  %563 = vmatprep.mubr.f32.mxu0 %v330_v8 }
  0x76   : > { %743 = vmatprep.mubr.f32.mxu1 %v357_v59  ;;  %1294 = vmatpush1.bf16.msra.mxu0 %v1701_v13  ;;  %v339_v13 = vld [vmem:[%s1593_s26 + $0x230] sm:$0xff] }
  0x77   : > { %1295 = vmatprep.subr.bf16.mxu0 %v1444_v3 }
  0x78   : > { %564 = vmatmul.mubr.f32.gmra.mrb[24].mxu0 %v329_v62 }
  0x79   : > { %744 = vmatmul.mubr.f32.gmra.mrb[24].mxu1 %v356_v60  ;;  %568 = vmatprep.mubr.f32.mxu0 %v335_v61 }
  0x7a   : > { %1184 = vmatprep.mubr.f32.mxu1 %v273_v63  ;;  %1297 = vmatpush1.bf16.msra.mxu0 %v1718_v20  ;;  %v344_v20 = vld [vmem:[%s1593_s26 + $0x258] sm:$0xff] }
  0x7b   : > { %1298 = vmatprep.subr.bf16.mxu0 %v1444_v3 }
  0x7c   : > { %569 = vmatmul.mubr.f32.gmra.mrb[26].mxu0 %v334_v5 }
  0x7d   : > { %1185 = vmatmul.mubr.f32.vlgmr.msra.gmra.mrb[26].mxu1 %v278_v0  ;;  %573 = vmatprep.mubr.f32.mxu0 %v340_v1 }
  0x7e   : > { %1187 = vmatprep.mubr.f32.mxu1 %v283_v2  ;;  %1300 = vmatpush1.bf16.msra.mxu0 %v1735_v27  ;;  %v349_v27 = vld [vmem:[%s1593_s26 + $0x280] sm:$0xff] }
  0x7f   : > { %1301 = vmatprep.subr.bf16.mxu0 %v1444_v3 }
  0x80   : > { %574 = vmatmul.mubr.f32.gmra.mrb[28].mxu0 %v339_v13 }
  0x81   : > { %1188 = vmatmul.mubr.f32.gmra.mrb[28].mxu1 %v288_v12  ;;  %578 = vmatprep.mubr.f32.mxu0 %v345_v4 }
  0x82   : > { %1190 = vmatprep.mubr.f32.mxu1 %v293_v6  ;;  %1303 = vmatpush1.bf16.msra.mxu0 %v1752_v34  ;;  %v318_v34 = vld [vmem:[%s1593_s26 + $0x188] sm:$0xff] }
  0x83   : > { %1304 = vmatprep.subr.bf16.mxu0 %v1444_v3  ;;  %v354_v3 = vld [vmem:[%s1593_s26 + $0x2a8] sm:$0xff] }
  0x84   : > { %579 = vmatmul.mubr.f32.gmra.mrb[30].mxu0 %v344_v20 }
  0x85   : > { %1191 = vmatmul.mubr.f32.gmra.mrb[30].mxu1 %v298_v7  ;;  %583 = vmatprep.mubr.f32.mxu0 %v350_v9 }
  0x86   : > { %1193 = vmatprep.mubr.f32.mxu1 %v303_v10  ;;  %1306 = vmatpush1.bf16.msra.mxu0 %v1775_v43  ;;  %v328_v43 = vld [vmem:[%s1593_s26 + $0x1d8] sm:$0xff] }
  0x88   : > { %584 = vmatmul.mubr.f32.gmra.mrb[32].mxu0 %v349_v27 }
  0x89   : > { %1194 = vmatmul.mubr.f32.gmra.mrb[32].mxu1 %v308_v11  ;;  %588 = vmatprep.mubr.f32.mxu0 %v355_v18 }
  0x8a   : > { %1196 = vmatprep.mubr.f32.mxu1 %v313_v14 }
  0x8c   : > { %589 = vmatmul.mubr.f32.gmra.mrb[34].mxu0 %v354_v3 }
  0x8d   : > { %1197 = vmatmul.mubr.f32.gmra.mrb[34].mxu1 %v318_v34  ;;  %658 = vmatprep.mubr.f32.mxu0 %v272_v15 }
  0x8e   : > { %1199 = vmatprep.mubr.f32.mxu1 %v323_v16 }
  0x90   : > { %659 = vmatmul.mubr.f32.vlgmr.msra.gmra.mrb[0].mxu0 %v271_v17 }
  0x91   : > { %1200 = vmatmul.mubr.f32.gmra.mrb[36].mxu1 %v328_v43  ;;  %663 = vmatprep.mubr.f32.mxu0 %v277_v19 }
  0x92   : > { %1202 = vmatprep.mubr.f32.mxu1 %v333_v21 }
  0x94   : > { %664 = vmatmul.mubr.f32.gmra.mrb[2].mxu0 %v276_v22 }
  0x95   : > { %1203 = vmatmul.mubr.f32.gmra.mrb[38].mxu1 %v338_v23  ;;  %668 = vmatprep.mubr.f32.mxu0 %v282_v25 }
  0x96   : > { %1205 = vmatprep.mubr.f32.mxu1 %v343_v24 }
  0x98   : > { %669 = vmatmul.mubr.f32.gmra.mrb[4].mxu0 %v281_v26 }
  0x99   : > { %1206 = vmatmul.mubr.f32.gmra.mrb[40].mxu1 %v348_v28  ;;  %673 = vmatprep.mubr.f32.mxu0 %v287_v29 }
  0x9a   : > { %1208 = vmatprep.mubr.f32.mxu1 %v353_v31 }
  0x9c   : > { %674 = vmatmul.mubr.f32.gmra.mrb[6].mxu0 %v286_v32 }
  0x9d   : > { %1209 = vmatmul.mubr.f32.gmra.mrb[42].mxu1 %v358_v33  ;;  %678 = vmatprep.mubr.f32.mxu0 %v292_v30 }
  0xa0   : > { %679 = vmatmul.mubr.f32.gmra.mrb[8].mxu0 %v291_v35  ;;  %v1960_v35 = vld [vmem:[%s2055_s2] ss:$0 sm:$0xff] }
 0x11c   : > { %v685_v37 = vpop.f32.mrb[0].mxu1 }
 0x11d   : > { %v687_v38 = vpop.f32.mrb[1].mxu1 }
 0x120   : > { %v690_v39 = vpop.f32.mrb[2].mxu1 }
 0x121   : > { %v692_v40 = vpop.f32.mrb[3].mxu1 }
 0x122   : > { %v1967_v40 = vld [vmem:[%s2056_s3] ss:$0 sm:$0xff] }
 0x124   : > { %v695_v41 = vpop.f32.mrb[4].mxu1 }
 0x125   : > { %v697_v36 = vpop.f32.mrb[5].mxu1 }
 0x128   : > { %v700_v42 = vpop.f32.mrb[6].mxu1 }
 0x129   : > { %v702_v45 = vpop.f32.mrb[7].mxu1 }
 0x12c   : > { %v705_v46 = vpop.f32.mrb[8].mxu1 }
 0x12d   : > { %v707_v47 = vpop.f32.mrb[9].mxu1 }
 0x12f   : > { %v530_v44 = vpop.f32.mrb[10].mxu0 }
 0x130   : > { %v686_v48 = vadd.f32 %v685_v37, %v530_v44  ;;  %v532_v49 = vpop.f32.mrb[11].mxu0  ;;  %v710_v51 = vpop.f32.mrb[10].mxu1 }
 0x131   : > { %v712_v52 = vpop.f32.mrb[11].mxu1 }
 0x133   : > { %v535_v50 = vpop.f32.mrb[12].mxu0 }
 0x134   : > { %v691_v53 = vadd.f32 %v690_v39, %v535_v50  ;;  %v537_v54 = vpop.f32.mrb[13].mxu0  ;;  %v715_v55 = vpop.f32.mrb[12].mxu1 }
 0x135   : > { %v717_v57 = vpop.f32.mrb[13].mxu1 }
 0x137   : > { %v540_v56 = vpop.f32.mrb[14].mxu0 }
 0x138   : > { %v696_v58 = vadd.f32 %v695_v41, %v540_v56  ;;  %v542_v8 = vpop.f32.mrb[15].mxu0  ;;  %v720_v59 = vpop.f32.mrb[14].mxu1 }
 0x139   : > { %v722_v62 = vpop.f32.mrb[15].mxu1 }
 0x13b   : > { %v545_v60 = vpop.f32.mrb[16].mxu0 }
 0x13c   : > { %v1941_v61 = vadd.f32 %v700_v42, %v545_v60  ;;  %v547_v63 = vpop.f32.mrb[17].mxu0  ;;  %v725_v5 = vpop.f32.mrb[16].mxu1 }
 0x13d   : > { %v727_v0 = vpop.f32.mrb[17].mxu1 }
 0x13f   : > { %v550_v1 = vpop.f32.mrb[18].mxu0 }
 0x140   : > { %v706_v2 = vadd.f32 %v705_v46, %v550_v1  ;;  %v552_v13 = vpop.f32.mrb[19].mxu0  ;;  %v730_v12 = vpop.f32.mrb[18].mxu1 }
 0x141   : > { %v732_v4 = vpop.f32.mrb[19].mxu1 }
 0x143   : > { %v555_v6 = vpop.f32.mrb[20].mxu0 }
 0x144   : > { %v1943_v20 = vadd.f32 %v710_v51, %v555_v6  ;;  %v557_v7 = vpop.f32.mrb[21].mxu0  ;;  %v735_v9 = vpop.f32.mrb[20].mxu1 }
 0x145   : > { %v737_v10 = vpop.f32.mrb[21].mxu1 }
 0x147   : > { %v560_v27 = vpop.f32.mrb[22].mxu0 }
 0x148   : > { %v716_v11 = vadd.f32 %v715_v55, %v560_v27  ;;  %v562_v18 = vpop.f32.mrb[23].mxu0  ;;  %v740_v14 = vpop.f32.mrb[22].mxu1 }
 0x149   : > { %v742_v3 = vpop.f32.mrb[23].mxu1 }
 0x14b   : > { %v565_v34 = vpop.f32.mrb[24].mxu0 }
 0x14c   : > { %v1945_v15 = vadd.f32 %v720_v59, %v565_v34  ;;  %v567_v16 = vpop.f32.mrb[25].mxu0  ;;  %v745_v17 = vpop.f32.mrb[24].mxu1 }
 0x14d   : > { %v747_v43 = vpop.f32.mrb[25].mxu1 }
 0x14f   : > { %v570_v19 = vpop.f32.mrb[26].mxu0 }
 0x150   : > { %v1947_v21 = vadd.f32 %v725_v5, %v570_v19  ;;  %v572_v22 = vpop.f32.mrb[27].mxu0  ;;  %v1186_v23 = vpop.f32.mrb[26].mxu1 }
 0x151   : > { %v815_v25 = vpop.f32.mrb[27].mxu1 }
 0x153   : > { %v575_v24 = vpop.f32.mrb[28].mxu0 }
 0x154   : > { %v1949_v26 = vadd.f32 %v730_v12, %v575_v24  ;;  %v577_v28 = vpop.f32.mrb[29].mxu0  ;;  %v1951_v29 = vpop.f32.mrb[28].mxu1 }
 0x155   : > { %v1953_v31 = vpop.f32.mrb[29].mxu1 }
 0x157   : > { %v580_v32 = vpop.f32.mrb[30].mxu0 }
 0x158   : > { %v1955_v33 = vadd.f32 %v735_v9, %v580_v32  ;;  %v1192_v30 = vpop.f32.mrb[30].mxu1  ;;  %v582_v37 = vpop.f32.mrb[31].mxu0 }
 0x159   : > { %v841_v38 = vadd.f32 %v1192_v30, %v686_v48  ;;  %v1962_v39 = vpop.f32.mrb[31].mxu1 }
 0x15b   : > { %v916_v41 = vmul.f32 %v1960_v35, %v841_v38  ;;  %v585_v36 = vpop.f32.mrb[32].mxu0 }
 0x15c   : > { %v1971_v42 = vadd.f32 %v740_v14, %v585_v36  ;;  %v1195_v45 = vpop.f32.mrb[32].mxu1  ;;  %v587_v46 = vpop.f32.mrb[33].mxu0 }
 0x15d   : > { %v941_v47 = vadd.f32 %v1967_v40, %v916_v41  ;;  %v851_v44 = vadd.f32 %v1195_v45, %v696_v58  ;;  %v845_v49 = vpop.f32.mrb[33].mxu1 }
 0x15e   : > { %v846_v48 = vadd.f32 %v845_v49, %v691_v53 }
 0x15f   : > { %v959_v51 = vmax.f32 %v941_v47, 0.0  ;;  %v918_v52 = vmul.f32 %v1960_v35, %v851_v44  ;;  %v590_v50 = vpop.f32.mrb[34].mxu0 }
 0x160   : > { %v917_v54 = vmul.f32 %v1960_v35, %v846_v48  ;;  %v1981_v55 = vadd.f32 %v745_v17, %v590_v50  ;;  %v1198_v57 = vpop.f32.mrb[34].mxu1  ;;  %v592_v56 = vpop.f32.mrb[35].mxu0 }
 0x161   : > { %977 = vst [vmem:[%s1977_s15 + $0x28] sm:$0xff] %v959_v51  ;;  %v943_v58 = vadd.f32 %v1967_v40, %v918_v52  ;;  %v861_v8 = vadd.f32 %v1198_v57, %v706_v2  ;;  %v855_v59 = vpop.f32.mrb[35].mxu1 }
 0x162   : > { %v942_v62 = vadd.f32 %v1967_v40, %v917_v54  ;;  %v856_v53 = vadd.f32 %v855_v59, %v1941_v61 }
 0x163   : > { %v961_v60 = vmax.f32 %v943_v58, 0.0  ;;  %v920_v63 = vmul.f32 %v1960_v35, %v861_v8  ;;  %v660_v5 = vpop.f32.mrb[0].mxu0 }
 0x164   : > { %v960_v0 = vmax.f32 %v942_v62, 0.0  ;;  %v919_v1 = vmul.f32 %v1960_v35, %v856_v53  ;;  %v816_v13 = vadd.f32 %v815_v25, %v660_v5  ;;  %v1201_v12 = vpop.f32.mrb[36].mxu1  ;;  %v662_v4 = vpop.f32.mrb[1].mxu0 }
 0x165   : > { %979 = vst [vmem:[%s1977_s15 + $0x38] sm:$0xff] %v961_v60  ;;  %v945_v6 = vadd.f32 %v1967_v40, %v920_v63  ;;  %v871_v2 = vadd.f32 %v1201_v12, %v716_v11  ;;  %v865_v7 = vpop.f32.mrb[37].mxu1 }
 0x166   : > { %978 = vst [vmem:[%s1977_s15 + $0x30] sm:$0xff] %v960_v0  ;;  %v944_v9 = vadd.f32 %v1967_v40, %v919_v1  ;;  %v911_v61 = vmul.f32 %v1960_v35, %v816_v13  ;;  %v866_v10 = vadd.f32 %v865_v7, %v1943_v20 }
 0x167   : > { %v963_v27 = vmax.f32 %v945_v6, 0.0  ;;  %v922_v18 = vmul.f32 %v1960_v35, %v871_v2  ;;  %v665_v14 = vpop.f32.mrb[2].mxu0 }
 0x168   : > { %v962_v3 = vmax.f32 %v944_v9, 0.0  ;;  %v936_v34 = vadd.f32 %v1967_v40, %v911_v61  ;;  %v921_v16 = vmul.f32 %v1960_v35, %v866_v10  ;;  %v821_v11 = vadd.f32 %v1186_v23, %v665_v14  ;;  %v1204_v17 = vpop.f32.mrb[38].mxu1  ;;  %v667_v43 = vpop.f32.mrb[3].mxu0 }
 0x169   : > { %981 = vst [vmem:[%s1977_s15 + $0x48] sm:$0xff] %v963_v27  ;;  %v947_v19 = vadd.f32 %v1967_v40, %v922_v18  ;;  %v881_v22 = vadd.f32 %v1204_v17, %v1947_v21  ;;  %v875_v25 = vpop.f32.mrb[39].mxu1 }
 0x16a   : > { %980 = vst [vmem:[%s1977_s15 + $0x40] sm:$0xff] %v962_v3  ;;  %v954_v20 = vmax.f32 %v936_v34, 0.0  ;;  %v946_v24 = vadd.f32 %v1967_v40, %v921_v16  ;;  %v912_v28 = vmul.f32 %v1960_v35, %v821_v11  ;;  %v876_v32 = vadd.f32 %v875_v25, %v1945_v15 }
 0x16b   : > { %v965_v30 = vmax.f32 %v947_v19, 0.0  ;;  %v924_v23 = vmul.f32 %v1960_v35, %v881_v22  ;;  %v670_v37 = vpop.f32.mrb[4].mxu0 }
 0x16c   : > { %972 = vst [vmem:[%s1977_s15] sm:$0xff] %v954_v20  ;;  %v964_v38 = vmax.f32 %v946_v24, 0.0  ;;  %v937_v41 = vadd.f32 %v1967_v40, %v912_v28  ;;  %v923_v21 = vmul.f32 %v1960_v35, %v876_v32  ;;  %v826_v36 = vadd.f32 %v1953_v31, %v670_v37  ;;  %v1207_v45 = vpop.f32.mrb[40].mxu1  ;;  %v672_v46 = vpop.f32.mrb[5].mxu0 }
 0x16d   : > { %983 = vst [vmem:[%s1977_s15 + $0x58] sm:$0xff] %v965_v30  ;;  %v949_v47 = vadd.f32 %v1967_v40, %v924_v23  ;;  %v891_v15 = vadd.f32 %v1207_v45, %v1955_v33  ;;  %v885_v44 = vpop.f32.mrb[41].mxu1 }
 0x16e   : > { %982 = vst [vmem:[%s1977_s15 + $0x50] sm:$0xff] %v964_v38  ;;  %v955_v49 = vmax.f32 %v937_v41, 0.0  ;;  %v948_v48 = vadd.f32 %v1967_v40, %v923_v21  ;;  %v913_v51 = vmul.f32 %v1960_v35, %v826_v36  ;;  %v886_v52 = vadd.f32 %v885_v44, %v1949_v26 }
 0x16f   : > { %v967_v50 = vmax.f32 %v949_v47, 0.0  ;;  %v926_v31 = vmul.f32 %v1960_v35, %v891_v15  ;;  %v675_v54 = vpop.f32.mrb[6].mxu0 }
 0x170   : > { %973 = vst [vmem:[%s1977_s15 + $0x8] sm:$0xff] %v955_v49  ;;  %v966_v57 = vmax.f32 %v948_v48, 0.0  ;;  %v938_v56 = vadd.f32 %v1967_v40, %v913_v51  ;;  %v925_v33 = vmul.f32 %v1960_v35, %v886_v52  ;;  %v831_v58 = vadd.f32 %v1951_v29, %v675_v54  ;;  %v1210_v8 = vpop.f32.mrb[42].mxu1  ;;  %v677_v59 = vpop.f32.mrb[7].mxu0 }
 0x171   : > { %985 = vst [vmem:[%s1977_s15 + $0x68] sm:$0xff] %v967_v50  ;;  %v951_v62 = vadd.f32 %v1967_v40, %v926_v31  ;;  %v901_v26 = vadd.f32 %v1210_v8, %v1981_v55  ;;  %v895_v53 = vpop.f32.mrb[43].mxu1 }
 0x172   : > { %984 = vst [vmem:[%s1977_s15 + $0x60] sm:$0xff] %v966_v57  ;;  %v956_v60 = vmax.f32 %v938_v56, 0.0  ;;  %v950_v63 = vadd.f32 %v1967_v40, %v925_v33  ;;  %v914_v5 = vmul.f32 %v1960_v35, %v831_v58  ;;  %v896_v0 = vadd.f32 %v895_v53, %v1971_v42 }
 0x173   : > { %v969_v1 = vmax.f32 %v951_v62, 0.0  ;;  %v928_v29 = vmul.f32 %v1960_v35, %v901_v26  ;;  %v680_v13 = vpop.f32.mrb[8].mxu0 }
 0x174   : > { %974 = vst [vmem:[%s1977_s15 + $0x10] sm:$0xff] %v956_v60  ;;  %v968_v12 = vmax.f32 %v950_v63, 0.0  ;;  %v939_v55 = vadd.f32 %v1967_v40, %v914_v5  ;;  %v927_v4 = vmul.f32 %v1960_v35, %v896_v0  ;;  %v836_v6 = vadd.f32 %v1962_v39, %v680_v13  ;;  %v682_v2 = vpop.f32.mrb[9].mxu0 }
 0x175   : > { %987 = vst [vmem:[%s1977_s15 + $0x78] sm:$0xff] %v969_v1  ;;  %v953_v42 = vadd.f32 %v1967_v40, %v928_v29 }
 0x176   : > { %986 = vst [vmem:[%s1977_s15 + $0x70] sm:$0xff] %v968_v12  ;;  %v957_v7 = vmax.f32 %v939_v55, 0.0  ;;  %v952_v9 = vadd.f32 %v1967_v40, %v927_v4  ;;  %v915_v61 = vmul.f32 %v1960_v35, %v836_v6 }
 0x177   : > { %v971_v10 = vmax.f32 %v953_v42, 0.0 }
 0x178   : > { %975 = vst [vmem:[%s1977_s15 + $0x18] sm:$0xff] %v957_v7  ;;  %v970_v27 = vmax.f32 %v952_v9, 0.0  ;;  %v940_v18 = vadd.f32 %v1967_v40, %v915_v61 }
 0x179   : > { %989 = vst [vmem:[%s1977_s15 + $0x88] sm:$0xff] %v971_v10 }
 0x17a   : > { %988 = vst [vmem:[%s1977_s15 + $0x80] sm:$0xff] %v970_v27  ;;  %v958_v14 = vmax.f32 %v940_v18, 0.0 }
 0x17c   : > { %976 = vst [vmem:[%s1977_s15 + $0x20] sm:$0xff] %v958_v14 }
 0x17d PF: > { %s14_s17 = sadd.s32 1, %s1442_s17   ;;  %s2058_s15 = smov %s1438_s16 }
 0x17e   : > { %p11_p5 = scmp.ge.s32.totalorder %s14_s17, 4   ;;  %s2059_s16 = smov %s2061_s18 }
 0x180   :  { %13 = sbr.rel (!%p11_p5) target bundleno = 2 (0x2), region = 75 }

// kernel: convnet3_forward.5
= control target key start
LH: loop header
LB: loop body
LE: loop exit
PB: predicated region body
PF: predicated region fallthrough
CT: control target
= control target key end

     0   :  { %v291_v3 = vmov 0.0|0.0   ;;  %vm292_vm0 = vmmov 0   ;;  %v293_v6 = vmov 0.0   ;;  %vm51_vm1 = vcmask 261120   ;;  %s487_s0 = inlined_call_operand.vmem [shape: f32[2,144,32], index: 0, kind: input, shape index: {}]   ;;  %s488_s1 = inlined_call_operand.vmem [shape: f32[32,128], index: 1, kind: input, shape index: {}]   ;;  %s489_s2 = inlined_call_operand.vmem [shape: f32[1,128], index: 2, kind: input, shape index: {}]   ;;  %s490_s3 = inlined_call_operand.hbm [shape: f32[2,128], index: 3, kind: output, shape index: {}]  }
   0x1   :  { %v136_v0 = vld [vmem:[%s488_s1] sm:$0xff]  ;;  %v137_v1 = vld [vmem:[%s488_s1 + $0x8] sm:$0xff]  ;;  %v138_v2 = vld [vmem:[%s488_s1 + $0x10] sm:$0xff]  ;;  %257 = vmatprep.subr.bf16.mxu0 %v291_v3  ;;  %254 = vmatprep.mubr.msk.f32.mxu0 %vm292_vm0, %v293_v6 }
   0x2   :  { %v258_v4 = vpack.c.bf16 %v137_v1, %v136_v0  ;;  %v139_v5 = vld [vmem:[%s488_s1 + $0x18] sm:$0xff]  ;;  %v15_v7 = vld [vmem:[%s487_s0] sm:$0xff]  ;;  %v16_v8 = vld [vmem:[%s487_s0 + $0x8] sm:$0xff] }
   0x3   :  { %v17_v9 = vld [vmem:[%s487_s0 + $0x10] sm:$0xff]  ;;  %v18_v10 = vld [vmem:[%s487_s0 + $0x18] sm:$0xff]  ;;  %v52_v11 = vsel %vm51_vm1, %v15_v7, 0.0  ;;  %v53_v12 = vsel %vm51_vm1, %v16_v8, 0.0  ;;  %v261_v13 = vpack.c.bf16 %v139_v5, %v138_v2  ;;  %v19_v14 = vld [vmem:[%s487_s0 + $0x20] sm:$0xff] }
   0x4   :  { %259 = vmatpush3.bf16.msra.mxu0 %v258_v4  ;;  %v54_v15 = vadd.f32 %v53_v12, %v52_v11  ;;  %v55_v16 = vsel %vm51_vm1, %v17_v9, 0.0  ;;  %v57_v17 = vsel %vm51_vm1, %v18_v10, 0.0  ;;  %v20_v18 = vld [vmem:[%s487_s0 + $0x28] sm:$0xff]  ;;  %v59_v20 = vsel %vm51_vm1, %v19_v14, 0.0  ;;  %v21_v21 = vld [vmem:[%s487_s0 + $0x30] sm:$0xff]  ;;  %v34_v23 = vld [vmem:[%s487_s0 + $0x98] sm:$0xff] }
   0x5   :  { %260 = vmatprep.subr.bf16.mxu0 %v291_v3  ;;  %v33_v22 = vld [vmem:[%s487_s0 + $0x90] sm:$0xff]  ;;  %v35_v25 = vld [vmem:[%s487_s0 + $0xa0] sm:$0xff]  ;;  %v36_v26 = vld [vmem:[%s487_s0 + $0xa8] sm:$0xff]  ;;  %v61_v27 = vsel %vm51_vm1, %v20_v18, 0.0  ;;  %v94_v29 = vsel %vm51_vm1, %v34_v23, 0.0  ;;  %v63_v35 = vsel %vm51_vm1, %v21_v21, 0.0 }
   0x6   :  { %v56_v19 = vadd.f32 %v55_v16, %v54_v15  ;;  %v93_v28 = vsel %vm51_vm1, %v33_v22, 0.0  ;;  %v22_v30 = vld [vmem:[%s487_s0 + $0x38] sm:$0xff]  ;;  %v37_v31 = vld [vmem:[%s487_s0 + $0xb0] sm:$0xff]  ;;  %v96_v34 = vsel %vm51_vm1, %v35_v25, 0.0  ;;  %v98_v36 = vsel %vm51_vm1, %v36_v26, 0.0  ;;  %v23_v37 = vld [vmem:[%s487_s0 + $0x40] sm:$0xff] }
   0x7   :  { %v95_v33 = vadd.f32 %v94_v29, %v93_v28  ;;  %v38_v38 = vld [vmem:[%s487_s0 + $0xb8] sm:$0xff]  ;;  %v65_v41 = vsel %vm51_vm1, %v22_v30, 0.0  ;;  %v100_v42 = vsel %vm51_vm1, %v37_v31, 0.0  ;;  %v24_v43 = vld [vmem:[%s487_s0 + $0x48] sm:$0xff]  ;;  %v39_v44 = vld [vmem:[%s487_s0 + $0xc0] sm:$0xff]  ;;  %v67_v47 = vsel %vm51_vm1, %v23_v37, 0.0 }
   0x8   :  { %262 = vmatpush3.bf16.msra.mxu0 %v261_v13  ;;  %v58_v24 = vadd.f32 %v57_v17, %v56_v19  ;;  %v102_v48 = vsel %vm51_vm1, %v38_v38, 0.0 }
   0x9   :  { %v97_v40 = vadd.f32 %v96_v34, %v95_v33 }
   0xa   :  { %v60_v32 = vadd.f32 %v59_v20, %v58_v24 }
   0xb   :  { %v99_v46 = vadd.f32 %v98_v36, %v97_v40 }
   0xc   :  { %v62_v39 = vadd.f32 %v61_v27, %v60_v32 }
   0xe   :  { %v64_v45 = vadd.f32 %v63_v35, %v62_v39 }
   0xf   :  { %8 = vsyncpa [#allocation3], 0  ;;  %v25_v49 = vld [vmem:[%s487_s0 + $0x50] sm:$0xff]  ;;  %v40_v50 = vld [vmem:[%s487_s0 + $0xc8] sm:$0xff]  ;;  %v101_v52 = vadd.f32 %v100_v42, %v99_v46  ;;  %v69_v53 = vsel %vm51_vm1, %v24_v43, 0.0  ;;  %v104_v54 = vsel %vm51_vm1, %v39_v44, 0.0 }
  0x10   :  { %v66_v51 = vadd.f32 %v65_v41, %v64_v45  ;;  %v26_v55 = vld [vmem:[%s487_s0 + $0x58] sm:$0xff]  ;;  %v41_v56 = vld [vmem:[%s487_s0 + $0xd0] sm:$0xff]  ;;  %v71_v59 = vsel %vm51_vm1, %v25_v49, 0.0  ;;  %v106_v60 = vsel %vm51_vm1, %v40_v50, 0.0  ;;  %v27_v61 = vld [vmem:[%s487_s0 + $0x60] sm:$0xff]  ;;  %vm149_vm2 = vcmask 1041409  }
  0x11   :  { %v103_v58 = vadd.f32 %v102_v48, %v101_v52  ;;  %v42_v62 = vld [vmem:[%s487_s0 + $0xd8] sm:$0xff]  ;;  %v73_v1 = vsel %vm51_vm1, %v26_v55, 0.0  ;;  %v108_v2 = vsel %vm51_vm1, %v41_v56, 0.0  ;;  %v28_v3 = vld [vmem:[%s487_s0 + $0x68] sm:$0xff]  ;;  %v43_v4 = vld [vmem:[%s487_s0 + $0xe0] sm:$0xff]  ;;  %v75_v7 = vsel %vm51_vm1, %v27_v61, 0.0 }
  0x12   :  { %v68_v57 = vadd.f32 %v67_v47, %v66_v51  ;;  %v110_v8 = vsel %vm51_vm1, %v42_v62, 0.0  ;;  %v29_v9 = vld [vmem:[%s487_s0 + $0x70] sm:$0xff]  ;;  %v44_v10 = vld [vmem:[%s487_s0 + $0xe8] sm:$0xff]  ;;  %v77_v13 = vsel %vm51_vm1, %v28_v3, 0.0  ;;  %v112_v14 = vsel %vm51_vm1, %v43_v4, 0.0  ;;  %v30_v15 = vld [vmem:[%s487_s0 + $0x78] sm:$0xff] }
  0x13   :  { %v105_v0 = vadd.f32 %v104_v54, %v103_v58  ;;  %v45_v16 = vld [vmem:[%s487_s0 + $0xf0] sm:$0xff]  ;;  %v79_v19 = vsel %vm51_vm1, %v29_v9, 0.0  ;;  %v114_v20 = vsel %vm51_vm1, %v44_v10, 0.0  ;;  %v31_v21 = vld [vmem:[%s487_s0 + $0x80] sm:$0xff]  ;;  %v46_v22 = vld [vmem:[%s487_s0 + $0xf8] sm:$0xff]  ;;  %v81_v25 = vsel %vm51_vm1, %v30_v15, 0.0 }
  0x14   :  { %v70_v63 = vadd.f32 %v69_v53, %v68_v57  ;;  %v116_v26 = vsel %vm51_vm1, %v45_v16, 0.0  ;;  %v32_v27 = vld [vmem:[%s487_s0 + $0x88] sm:$0xff]  ;;  %v47_v28 = vld [vmem:[%s487_s0 + $0x100] sm:$0xff]  ;;  %v83_v31 = vsel %vm51_vm1, %v31_v21, 0.0  ;;  %v118_v32 = vsel %vm51_vm1, %v46_v22, 0.0  ;;  %v49_v38 = vld [vmem:[%s487_s0 + $0x110] sm:$0xff] }
  0x15   :  { %v107_v6 = vadd.f32 %v106_v60, %v105_v0  ;;  %v48_v33 = vld [vmem:[%s487_s0 + $0x108] sm:$0xff]  ;;  %v85_v36 = vsel %vm51_vm1, %v32_v27, 0.0  ;;  %v120_v37 = vsel %vm51_vm1, %v47_v28, 0.0  ;;  %v50_v42 = vld [vmem:[%s487_s0 + $0x118] sm:$0xff]  ;;  %v124_v45 = vsel %vm51_vm1, %v49_v38, 0.0  ;;  %s294_s9 = smov [#allocation2]  }
  0x16   :  { %v72_v5 = vadd.f32 %v71_v59, %v70_v63  ;;  %v122_v41 = vsel %vm51_vm1, %v48_v33, 0.0  ;;  %v126_v48 = vsel %vm51_vm1, %v50_v42, 0.0  ;;  %s231_s10 = sshll.u32 %s294_s9, 4  ;;  %s232_s10 = int_to_ptr.vmem [resolvable:$true] %s231_s10 }
  0x17   :  { %v109_v12 = vadd.f32 %v108_v2, %v107_v6  ;;  %s267_s11 = scalar_lea.vmem %s232_s10, 32  ;;  %p272_p1 = scmp.lt.s32.totalorder %s232_s10, %s232_s10 }
  0x18   :  { %v74_v11 = vadd.f32 %v73_v1, %v72_v5  ;;  %v239_v1 = vld [vmem:[%s489_s2] ss:$0 sm:$0xff]  ;;  %p268_p0 = scmp.ne.s32.totalorder %s232_s10, %s267_s11  ;;  %p273_p2 = scmp.lt.s32.totalorder %s267_s11, %s267_s11 }
  0x19   :  { %v111_v18 = vadd.f32 %v110_v8, %v109_v12 }
  0x1a   :  { %v76_v17 = vadd.f32 %v75_v7, %v74_v11  ;;  %p274_p3 = por %p273_p2, %p272_p1 }
  0x1b   :  { %v113_v24 = vadd.f32 %v112_v14, %v111_v18 }
  0x1c   :  { %v78_v23 = vadd.f32 %v77_v13, %v76_v17  ;;  %p275_p4 = pnand %p274_p3, %p268_p0 }
  0x1d   :  { %v115_v30 = vadd.f32 %v114_v20, %v113_v24 }
  0x1e   :  { %v80_v29 = vadd.f32 %v79_v19, %v78_v23 }
  0x1f   :  { %v117_v35 = vadd.f32 %v116_v26, %v115_v30 }
  0x20   :  { %v82_v34 = vadd.f32 %v81_v25, %v80_v29 }
  0x21   :  { %v119_v40 = vadd.f32 %v118_v32, %v117_v35 }
  0x22   :  { %v84_v39 = vadd.f32 %v83_v31, %v82_v34 }
  0x23   :  { %v121_v44 = vadd.f32 %v120_v37, %v119_v40 }
  0x24   :  { %v86_v43 = vadd.f32 %v85_v36, %v84_v39 }
  0x25   :  { %v123_v47 = vadd.f32 %v122_v41, %v121_v44 }
  0x26   :  { %v87_v46 = vrot.slane %v86_v43, 4 }
  0x27   :  { %v125_v50 = vadd.f32 %v124_v45, %v123_v47 }
  0x28   :  { %v88_v49 = vadd.f32 %v87_v46, %v86_v43 }
  0x29   :  { %v127_v52 = vadd.f32 %v126_v48, %v125_v50 }
  0x2a   :  { %v89_v51 = vrot.slane %v88_v49, 2 }
  0x2b   :  { %v128_v54 = vrot.slane %v127_v52, 4 }
  0x2c   :  { %v90_v53 = vadd.f32 %v89_v51, %v88_v49 }
  0x2d   :  { %v129_v56 = vadd.f32 %v128_v54, %v127_v52 }
  0x2e   :  { %v91_v55 = vrot.slane %v90_v53, 1 }
  0x2f   :  { %v130_v57 = vrot.slane %v129_v56, 2 }
  0x30   :  { %v92_v58 = vadd.f32 %v91_v55, %v90_v53 }
  0x31   :  { %v131_v59 = vadd.f32 %v130_v57, %v129_v56 }
  0x32   :  { %v134_v62 = vmul.f32 0.0069444445, %v92_v58 }
  0x33   :  { %v132_v60 = vrot.slane %v131_v59, 1 }
  0x35   :  { %v133_v61 = vadd.f32 %v132_v60, %v131_v59 }
  0x37   :  { %v135_v63 = vmul.f32 0.0069444445, %v133_v61 }
  0x39   :  { %v150_v0 = vsel %vm149_vm2, %v135_v63, %v134_v62 }
  0x3a   :  { %255 = vmatmul.mubr.msk.f32.vlgmr.msra.gmra.mrb[0].mxu0 %vm51_vm1, %v150_v0 }
 0x10d   :  { %v219_v2 = vpop.f32.mrb[0].mxu0 }
 0x10e   :  { %v220_v3 = vadd.f32 %v239_v1, %v219_v2  ;;  %v256_v4 = vpop.f32.mrb[1].mxu0 }
 0x110   :  { %v223_v5 = vmax.f32 %v220_v3, 0.0 }
 0x112   :  { %224 = vst [vmem:[#allocation2] sm:$0x3] %v223_v5 }
 0x113   :  { %278 = shalt.err (!%p275_p4)
}
 0x114   :  { %s279_s14 = scalar_lea.hbm %s490_s3, 32 }
 0x115   :  { %p280_p5 = scmp.ne.s32.totalorder %s490_s3, %s279_s14  ;;  %p283_p6 = scmp.lt.u32.totalorder %s279_s14, %s490_s3 }
 0x117   :  { %p285_p7 = pnand %p283_p6, %p280_p5 }
 0x119   :  { %288 = shalt.err (!%p285_p7)
}
 0x11a   :  { %234 = dma.vmem_to_hbm [thread:$0]  %s232_s10, 32, %s490_s3, [#allocation3]  }
 0x11b   :  { %289 = dma.done.wait [#allocation3], 32  }
 0x11c   :  { %290 = vsyncadd [#allocation3], 4294967264 }
 0x11d   :  { %238 = vsyncpa [#allocation3], 1 }

</bundles_post_ra>
